<compile_context>
chip_gen: v7x
topology: tpu7x:2x2x1
jax: 0.10.0
libtpu: 0.0.40
codegen_flags: <defaults>
</compile_context>

<pallas_src>
import functools

import jax
import jax.numpy as jnp
from jax.experimental import pallas as pl
from jax.experimental.pallas import tpu as pltpu

# ---------------- configuration (small, consistent with the module) ----------
BATCH = 2
C_IN = 3          # n_input_channels
IMG = 16          # img_size
EMBED = 32        # embedding_dim
KSIZE, STRIDE, PAD = 7, 2, 3                # conv tokenizer
POOL_K, POOL_S, POOL_P = 3, 2, 1            # max pool
NUM_LAYERS = 2
NUM_HEADS = 2
MLP_DIM = 64
NUM_CLASSES = 10
NC_PAD = 128      # lane-dense padded classifier width
K_IM2COL = KSIZE * KSIZE * C_IN             # 147, no explicit padding


# ---------------- the single fused Pallas kernel ------------------------------

def cct_fused_kernel(
    patches_ref, wconv_ref, pos_ref,
    ln1w_ref, ln1b_ref, wqkv_ref, bqkv_ref, wo_ref, bo_ref,
    ln2w_ref, ln2b_ref, w1_ref, b1_ref, w2_ref, b2_ref,
    normw_ref, normb_ref, wpool_ref, bpool_ref, wfc_ref, bfc_ref,
    logits_ref, feat_ref,
    *, seq, heads, layers, taps):
    eps = 1e-5
    d = pos_ref.shape[-1]
    hd = d // heads
    scale = 1.0 / float(hd) ** 0.5
    nt = (((1,), (1,)), ((), ()))       # contract last dims (rhs "transposed")
    bf16, f32 = jnp.bfloat16, jnp.float32

    def layer_norm(x, w, b):
        mu = jnp.mean(x, axis=-1, keepdims=True)
        var = jnp.mean(jnp.square(x - mu), axis=-1, keepdims=True)
        return (x - mu) * jax.lax.rsqrt(var + eps) * w + b

    def softmax_lastdim(s):
        s = s - jnp.max(s, axis=-1, keepdims=True)
        p = jnp.exp(s)
        return p * pl.reciprocal(jnp.sum(p, axis=-1, keepdims=True), approx=True)

    # ---- tokenizer: conv (im2col matmul, bias=False) + ReLU + fused maxpool --
    # Rows are laid out (tap, pooled-position); out-of-bounds pool taps are
    # all-zero patches -> conv output 0, which never exceeds the post-ReLU max.
    # TODO(synk): the zero-patch pool trick relies on conv_bias=False + ReLU.
    convall = jnp.maximum(
        jnp.dot(patches_ref[0], wconv_ref[...],
                preferred_element_type=f32), 0.0)            # (taps*seq, d) f32
    x = convall[0:seq]
    for t in range(1, taps):
        x = jnp.maximum(x, convall[t * seq:(t + 1) * seq])   # (seq, d)

    # ---- learnable positional embedding --------------------------------------
    x = x + pos_ref[...]

    # ---- transformer encoder layers (unrolled, weights stay in VMEM) ---------
    for l in range(layers):
        xn = layer_norm(x, ln1w_ref[l], ln1b_ref[l])
        # fused QKV: single (seq, d) x (d, 3d) bf16 matmul, f32 accumulation
        qkv = jnp.dot(xn.astype(bf16), wqkv_ref[l],
                      preferred_element_type=f32) + bqkv_ref[l]   # (seq, 3d) f32
        qkv_b = qkv.astype(bf16)
        wo_l = wo_ref[l]                                          # (d, d) bf16
        acc = x + bo_ref[l]                                       # residual + bias
        for h in range(heads):
            q_h = qkv_b[:, h * hd:(h + 1) * hd]
            k_h = qkv_b[:, d + h * hd:d + (h + 1) * hd]
            v_h = qkv_b[:, 2 * d + h * hd:2 * d + (h + 1) * hd]
            s = jax.lax.dot_general(q_h, k_h, nt,
                                    preferred_element_type=f32) * scale
            p = softmax_lastdim(s).astype(bf16)
            o_h = jnp.dot(p, v_h, preferred_element_type=f32)     # (seq, hd) f32
            # accumulate head output directly through its slice of wo (no concat)
            acc = acc + jnp.dot(o_h.astype(bf16), wo_l[h * hd:(h + 1) * hd, :],
                                preferred_element_type=f32)
        x = acc

        xn2 = layer_norm(x, ln2w_ref[l], ln2b_ref[l])
        h1 = jnp.dot(xn2.astype(bf16), w1_ref[l],
                     preferred_element_type=f32) + b1_ref[l]
        # TODO(synk): PyTorch nn.GELU default is erf-based; tanh approximation
        # used here for guaranteed Mosaic lowering.
        h1 = 0.5 * h1 * (1.0 + jnp.tanh(0.7978845608028654 *
                                        (h1 + 0.044715 * h1 * h1 * h1)))
        x = x + jnp.dot(h1.astype(bf16), w2_ref[l],
                        preferred_element_type=f32) + b2_ref[l]

    # ---- final LN -> seq-pool (softmax attention pool) -> classifier head ----
    xn = layer_norm(x, normw_ref[...], normb_ref[...])
    xb = xn.astype(bf16)
    a = jax.lax.dot_general(wpool_ref[...], xb, nt,
                            preferred_element_type=f32) + bpool_ref[...]  # (1, seq)
    a = softmax_lastdim(a)
    feat = jnp.dot(a.astype(bf16), xb, preferred_element_type=f32)        # (1, d)
    logits = jnp.dot(feat.astype(bf16), wfc_ref[...],
                     preferred_element_type=f32) + bfc_ref[...]           # (1, 128)
    logits_ref[0] = logits
    feat_ref[0] = feat


# ---------------- trace-time input prep (depends on x) ------------------------

def _conv_patches(x_nhwc, k, stride, pad):
    """x: (B,H,W,C) -> im2col patches (B, Ho, Wo, k*k*C)."""
    xp = jnp.pad(x_nhwc, ((0, 0), (pad, pad), (pad, pad), (0, 0)))
    b, hp, wp, c = xp.shape
    ho = (hp - k) // stride + 1
    wo = (wp - k) // stride + 1
    cols = []
    for i in range(k):
        for j in range(k):
            cols.append(xp[:, i:i + stride * ho:stride, j:j + stride * wo:stride, :])
    return jnp.concatenate(cols, axis=-1), ho, wo


def _pool_tap_patches(patches, ho, wo, pk, ps, pp):
    """(B,Ho,Wo,K) -> (pk*pk, B, Hp, Wp, K); padded taps become zero patches."""
    ppad = jnp.pad(patches, ((0, 0), (pp, pp), (pp, pp), (0, 0)))
    hp = (ho + 2 * pp - pk) // ps + 1
    wp = (wo + 2 * pp - pk) // ps + 1
    taps = []
    for i in range(pk):
        for j in range(pk):
            taps.append(ppad[:, i:i + ps * hp:ps, j:j + ps * wp:ps, :])
    return jnp.stack(taps, axis=0), hp, wp


# ---------------- parameters ---------------------------------------------------

def init_params(key):
    def normal(k, shape, std=0.02):
        return (std * jax.random.normal(k, shape)).astype(jnp.float32)

    keys = jax.random.split(key, 8 + 6 * NUM_LAYERS)
    ki = iter(keys)
    seq_conv = (IMG + 2 * PAD - KSIZE) // STRIDE + 1
    seq_len = ((seq_conv + 2 * POOL_P - POOL_K) // POOL_S + 1) ** 2

    params = {
        'conv_w': normal(next(ki), (KSIZE, KSIZE, C_IN, EMBED)),  # (k,k,Cin,D)
        'pos_emb': normal(next(ki), (1, seq_len, EMBED)),
        'norm_w': jnp.ones((1, EMBED), jnp.float32),
        'norm_b': jnp.zeros((1, EMBED), jnp.float32),
        'wpool': normal(next(ki), (EMBED, 1)),
        'bpool': jnp.zeros((1, 1), jnp.float32),
        'wfc': normal(next(ki), (EMBED, NUM_CLASSES)),
        'bfc': jnp.zeros((1, NUM_CLASSES), jnp.float32),
        'layers': [],
    }
    for _ in range(NUM_LAYERS):
        params['layers'].append({
            'ln1w': jnp.ones((1, EMBED), jnp.float32),
            'ln1b': jnp.zeros((1, EMBED), jnp.float32),
            'wqkv': normal(next(ki), (EMBED, 3 * EMBED)),
            'bqkv': jnp.zeros((1, 3 * EMBED), jnp.float32),
            'wo': normal(next(ki), (EMBED, EMBED)),
            'bo': jnp.zeros((1, EMBED), jnp.float32),
            'ln2w': jnp.ones((1, EMBED), jnp.float32),
            'ln2b': jnp.zeros((1, EMBED), jnp.float32),
            'w1': normal(next(ki), (EMBED, MLP_DIM)),
            'b1': jnp.zeros((1, MLP_DIM), jnp.float32),
            'w2': normal(next(ki), (MLP_DIM, EMBED)),
            'b2': jnp.zeros((1, EMBED), jnp.float32),
        })
    return params


# One-time weight preprocessing (hoisted out of the per-call forward path).
WEIGHT_ORDER = ('wconv', 'pos', 'ln1w', 'ln1b', 'wqkv', 'bqkv', 'wo', 'bo',
                'ln2w', 'ln2b', 'w1', 'b1', 'w2', 'b2',
                'normw', 'normb', 'wpool', 'bpool', 'wfc', 'bfc')


def prepare_params(params):
    bf = lambda a: a.astype(jnp.bfloat16)
    stk = lambda name: jnp.stack([lp[name] for lp in params['layers']], axis=0)
    prepped = {
        'wconv': bf(params['conv_w'].reshape(K_IM2COL, EMBED)),     # (147, D) bf16
        'pos': params['pos_emb'].reshape(-1, EMBED),                # (S, D) f32
        'ln1w': stk('ln1w'), 'ln1b': stk('ln1b'),
        'wqkv': bf(stk('wqkv')), 'bqkv': stk('bqkv'),
        'wo': bf(stk('wo')), 'bo': stk('bo'),
        'ln2w': stk('ln2w'), 'ln2b': stk('ln2b'),
        'w1': bf(stk('w1')), 'b1': stk('b1'),
        'w2': bf(stk('w2')), 'b2': stk('b2'),
        'normw': params['norm_w'], 'normb': params['norm_b'],
        'wpool': bf(params['wpool'].reshape(1, EMBED)),
        'bpool': params['bpool'],
        'wfc': bf(jnp.pad(params['wfc'], ((0, 0), (0, NC_PAD - NUM_CLASSES)))),
        'bfc': jnp.pad(params['bfc'], ((0, 0), (0, NC_PAD - NUM_CLASSES))),
    }
    return prepped


# ---------------- forward -------------------------------------------------------

def cct_forward(x_nchw, prepped):
    """Returns (logits (B, NUM_CLASSES), feat (B, EMBED)) like CCT.forward."""
    x = jnp.transpose(x_nchw, (0, 2, 3, 1)).astype(jnp.float32)     # NCHW -> NHWC
    B = x.shape[0]

    # tokenizer input prep: per-(pool-tap, pooled-position) im2col patches
    patches, ho, wo = _conv_patches(x, KSIZE, STRIDE, PAD)
    taps, hp, wp = _pool_tap_patches(patches, ho, wo, POOL_K, POOL_S, POOL_P)
    T = POOL_K * POOL_K
    S = hp * wp
    # (B, T*S, 147) bf16 — the only non-trivial DMA (un-padded contraction dim).
    tp = taps.transpose(1, 0, 2, 3, 4).reshape(B, T * S, K_IM2COL).astype(jnp.bfloat16)

    kernel = functools.partial(cct_fused_kernel, seq=S, heads=NUM_HEADS,
                               layers=NUM_LAYERS, taps=T)

    def per_batch(shape):
        nd = len(shape)
        return pl.BlockSpec((1,) + tuple(shape[1:]),
                            lambda b: (b,) + (0,) * (nd - 1))

    def shared(shape):
        nd = len(shape)
        return pl.BlockSpec(tuple(shape), lambda b: (0,) * nd)

    weights = [prepped[n] for n in WEIGHT_ORDER]
    in_specs = [per_batch(tp.shape)] + [shared(w.shape) for w in weights]
    out_specs = (pl.BlockSpec((1, 1, NC_PAD), lambda b: (b, 0, 0)),
                 pl.BlockSpec((1, 1, EMBED), lambda b: (b, 0, 0)))
    out_shape = (jax.ShapeDtypeStruct((B, 1, NC_PAD), jnp.float32),
                 jax.ShapeDtypeStruct((B, 1, EMBED), jnp.float32))

    # Grid over batch: independent per-batch work; on v7x the two grid points
    # are sharded across the two TensorCores. Weights keep the same block index
    # every step so they are not re-fetched between consecutive iterations.
    logits_pad, feat = pl.pallas_call(
        kernel,
        grid=(B,),
        in_specs=in_specs,
        out_specs=out_specs,
        out_shape=out_shape,
        compiler_params=pltpu.CompilerParams(
            dimension_semantics=("parallel",),
            vmem_limit_bytes=32 * 1024 * 1024),
    )(tp, *weights)

    return logits_pad[:, 0, :NUM_CLASSES], feat[:, 0, :]


if __name__ == "__main__":
    key = jax.random.PRNGKey(0)
    pkey, xkey = jax.random.split(key)
    params = init_params(pkey)
    prepped = prepare_params(params)          # one-time, outside the hot path
    x = jax.random.normal(xkey, (BATCH, C_IN, IMG, IMG), dtype=jnp.float32)

    fwd = jax.jit(cct_forward)
    logits, feat = fwd(x, prepped)
    jax.block_until_ready(logits)
    jax.block_until_ready(feat)

    assert logits.shape == (BATCH, NUM_CLASSES)
    assert feat.shape == (BATCH, EMBED)
    assert jnp.all(jnp.isfinite(logits)) and jnp.all(jnp.isfinite(feat))
    print("KERNEL_OK")
</pallas_src>

<mosaic_0001>
module attributes {stable_mosaic.version = 11 : i64} {
  func.func @cct_fused_kernel(%arg0: i32, %arg1: memref<1x144x147xbf16, #tpu.memory_space<vmem>>, %arg2: memref<147x32xbf16, #tpu.memory_space<vmem>>, %arg3: memref<16x32xf32, #tpu.memory_space<vmem>>, %arg4: memref<2x1x32xf32, #tpu.memory_space<vmem>>, %arg5: memref<2x1x32xf32, #tpu.memory_space<vmem>>, %arg6: memref<2x32x96xbf16, #tpu.memory_space<vmem>>, %arg7: memref<2x1x96xf32, #tpu.memory_space<vmem>>, %arg8: memref<2x32x32xbf16, #tpu.memory_space<vmem>>, %arg9: memref<2x1x32xf32, #tpu.memory_space<vmem>>, %arg10: memref<2x1x32xf32, #tpu.memory_space<vmem>>, %arg11: memref<2x1x32xf32, #tpu.memory_space<vmem>>, %arg12: memref<2x32x64xbf16, #tpu.memory_space<vmem>>, %arg13: memref<2x1x64xf32, #tpu.memory_space<vmem>>, %arg14: memref<2x64x32xbf16, #tpu.memory_space<vmem>>, %arg15: memref<2x1x32xf32, #tpu.memory_space<vmem>>, %arg16: memref<1x32xf32, #tpu.memory_space<vmem>>, %arg17: memref<1x32xf32, #tpu.memory_space<vmem>>, %arg18: memref<1x32xbf16, #tpu.memory_space<vmem>>, %arg19: memref<1x1xf32, #tpu.memory_space<vmem>>, %arg20: memref<32x128xbf16, #tpu.memory_space<vmem>>, %arg21: memref<1x128xf32, #tpu.memory_space<vmem>>, %arg22: memref<1x1x128xf32, #tpu.memory_space<vmem>>, %arg23: memref<1x1x32xf32, #tpu.memory_space<vmem>>) attributes {dimension_semantics = [#tpu.dimension_semantics<parallel>], iteration_bounds = array<i64: 2>, scalar_prefetch = 0 : i64, scratch_operands = 0 : i64, tpu.core_type = #tpu.core_type<tc>, window_params = [{transform_indices = @transform_0, window_bounds = array<i64: 1, 144, 147>}, {pipeline_mode = #tpu.pipeline_mode<synchronous>, transform_indices = @transform_1, window_bounds = array<i64: 147, 32>}, {pipeline_mode = #tpu.pipeline_mode<synchronous>, transform_indices = @transform_2, window_bounds = array<i64: 16, 32>}, {pipeline_mode = #tpu.pipeline_mode<synchronous>, transform_indices = @transform_3, window_bounds = array<i64: 2, 1, 32>}, {pipeline_mode = #tpu.pipeline_mode<synchronous>, transform_indices = @transform_4, window_bounds = array<i64: 2, 1, 32>}, {pipeline_mode = #tpu.pipeline_mode<synchronous>, transform_indices = @transform_5, window_bounds = array<i64: 2, 32, 96>}, {pipeline_mode = #tpu.pipeline_mode<synchronous>, transform_indices = @transform_6, window_bounds = array<i64: 2, 1, 96>}, {pipeline_mode = #tpu.pipeline_mode<synchronous>, transform_indices = @transform_7, window_bounds = array<i64: 2, 32, 32>}, {pipeline_mode = #tpu.pipeline_mode<synchronous>, transform_indices = @transform_8, window_bounds = array<i64: 2, 1, 32>}, {pipeline_mode = #tpu.pipeline_mode<synchronous>, transform_indices = @transform_9, window_bounds = array<i64: 2, 1, 32>}, {pipeline_mode = #tpu.pipeline_mode<synchronous>, transform_indices = @transform_10, window_bounds = array<i64: 2, 1, 32>}, {pipeline_mode = #tpu.pipeline_mode<synchronous>, transform_indices = @transform_11, window_bounds = array<i64: 2, 32, 64>}, {pipeline_mode = #tpu.pipeline_mode<synchronous>, transform_indices = @transform_12, window_bounds = array<i64: 2, 1, 64>}, {pipeline_mode = #tpu.pipeline_mode<synchronous>, transform_indices = @transform_13, window_bounds = array<i64: 2, 64, 32>}, {pipeline_mode = #tpu.pipeline_mode<synchronous>, transform_indices = @transform_14, window_bounds = array<i64: 2, 1, 32>}, {pipeline_mode = #tpu.pipeline_mode<synchronous>, transform_indices = @transform_15, window_bounds = array<i64: 1, 32>}, {pipeline_mode = #tpu.pipeline_mode<synchronous>, transform_indices = @transform_16, window_bounds = array<i64: 1, 32>}, {pipeline_mode = #tpu.pipeline_mode<synchronous>, transform_indices = @transform_17, window_bounds = array<i64: 1, 32>}, {pipeline_mode = #tpu.pipeline_mode<synchronous>, transform_indices = @transform_18, window_bounds = array<i64: 1, 1>}, {pipeline_mode = #tpu.pipeline_mode<synchronous>, transform_indices = @transform_19, window_bounds = array<i64: 32, 128>}, {pipeline_mode = #tpu.pipeline_mode<synchronous>, transform_indices = @transform_20, window_bounds = array<i64: 1, 128>}, {transform_indices = @transform_21, window_bounds = array<i64: 1, 1, 128>}, {transform_indices = @transform_22, window_bounds = array<i64: 1, 1, 32>}]} {
    %c0 = arith.constant 0 : index
    %c0_0 = arith.constant 0 : index
    %c0_1 = arith.constant 0 : index
    %0 = vector.load %arg1[%c0, %c0_0, %c0_1] : memref<1x144x147xbf16, #tpu.memory_space<vmem>>, vector<1x144x147xbf16>
    %1 = vector.shape_cast %0 : vector<1x144x147xbf16> to vector<144x147xbf16>
    %c0_2 = arith.constant 0 : index
    %c0_3 = arith.constant 0 : index
    %2 = vector.load %arg2[%c0_2, %c0_3] : memref<147x32xbf16, #tpu.memory_space<vmem>>, vector<147x32xbf16>
    %cst = arith.constant dense<0.000000e+00> : vector<144x32xf32>
    %3 = tpu.matmul %1, %2, %cst {dimension_numbers = #tpu.dot_dimension_numbers<[1], [0], [0], [1], [0, 0, 1, 1], [], []>} : vector<144x147xbf16>, vector<147x32xbf16>, vector<144x32xf32> -> vector<144x32xf32>
    %cst_4 = arith.constant 0.000000e+00 : f32
    %4 = vector.broadcast %cst_4 : f32 to vector<144x32xf32>
    %5 = arith.maximumf %3, %4 : vector<144x32xf32>
    %6 = vector.extract_strided_slice %5 {offsets = [0, 0], sizes = [16, 32], strides = [1, 1]} : vector<144x32xf32> to vector<16x32xf32>
    %7 = vector.extract_strided_slice %5 {offsets = [16, 0], sizes = [16, 32], strides = [1, 1]} : vector<144x32xf32> to vector<16x32xf32>
    %8 = arith.maximumf %6, %7 : vector<16x32xf32>
    %9 = vector.extract_strided_slice %5 {offsets = [32, 0], sizes = [16, 32], strides = [1, 1]} : vector<144x32xf32> to vector<16x32xf32>
    %10 = arith.maximumf %8, %9 : vector<16x32xf32>
    %11 = vector.extract_strided_slice %5 {offsets = [48, 0], sizes = [16, 32], strides = [1, 1]} : vector<144x32xf32> to vector<16x32xf32>
    %12 = arith.maximumf %10, %11 : vector<16x32xf32>
    %13 = vector.extract_strided_slice %5 {offsets = [64, 0], sizes = [16, 32], strides = [1, 1]} : vector<144x32xf32> to vector<16x32xf32>
    %14 = arith.maximumf %12, %13 : vector<16x32xf32>
    %15 = vector.extract_strided_slice %5 {offsets = [80, 0], sizes = [16, 32], strides = [1, 1]} : vector<144x32xf32> to vector<16x32xf32>
    %16 = arith.maximumf %14, %15 : vector<16x32xf32>
    %17 = vector.extract_strided_slice %5 {offsets = [96, 0], sizes = [16, 32], strides = [1, 1]} : vector<144x32xf32> to vector<16x32xf32>
    %18 = arith.maximumf %16, %17 : vector<16x32xf32>
    %19 = vector.extract_strided_slice %5 {offsets = [112, 0], sizes = [16, 32], strides = [1, 1]} : vector<144x32xf32> to vector<16x32xf32>
    %20 = arith.maximumf %18, %19 : vector<16x32xf32>
    %21 = vector.extract_strided_slice %5 {offsets = [128, 0], sizes = [16, 32], strides = [1, 1]} : vector<144x32xf32> to vector<16x32xf32>
    %22 = arith.maximumf %20, %21 : vector<16x32xf32>
    %c0_5 = arith.constant 0 : index
    %c0_6 = arith.constant 0 : index
    %23 = vector.load %arg3[%c0_5, %c0_6] : memref<16x32xf32, #tpu.memory_space<vmem>>, vector<16x32xf32>
    %24 = arith.addf %22, %23 : vector<16x32xf32>
    %c0_7 = arith.constant 0 : index
    %c0_8 = arith.constant 0 : index
    %c0_9 = arith.constant 0 : index
    %25 = vector.load %arg4[%c0_7, %c0_8, %c0_9] : memref<2x1x32xf32, #tpu.memory_space<vmem>>, vector<1x1x32xf32>
    %26 = vector.shape_cast %25 : vector<1x1x32xf32> to vector<1x32xf32>
    %c0_10 = arith.constant 0 : index
    %c0_11 = arith.constant 0 : index
    %c0_12 = arith.constant 0 : index
    %27 = vector.load %arg5[%c0_10, %c0_11, %c0_12] : memref<2x1x32xf32, #tpu.memory_space<vmem>>, vector<1x1x32xf32>
    %28 = vector.shape_cast %27 : vector<1x1x32xf32> to vector<1x32xf32>
    %cst_13 = arith.constant dense<0.000000e+00> : vector<16xf32>
    %29 = vector.multi_reduction <add>, %24, %cst_13 [1] : vector<16x32xf32> to vector<16xf32>
    %30 = vector.shape_cast %29 : vector<16xf32> to vector<16x1xf32>
    %cst_14 = arith.constant 3.200000e+01 : f32
    %31 = vector.broadcast %cst_14 : f32 to vector<16x1xf32>
    %32 = arith.divf %30, %31 : vector<16x1xf32>
    %33 = vector.broadcast %32 : vector<16x1xf32> to vector<16x32xf32>
    %34 = arith.subf %24, %33 : vector<16x32xf32>
    %35 = arith.mulf %34, %34 : vector<16x32xf32>
    %cst_15 = arith.constant dense<0.000000e+00> : vector<16xf32>
    %36 = vector.multi_reduction <add>, %35, %cst_15 [1] : vector<16x32xf32> to vector<16xf32>
    %37 = vector.shape_cast %36 : vector<16xf32> to vector<16x1xf32>
    %cst_16 = arith.constant 3.200000e+01 : f32
    %38 = vector.broadcast %cst_16 : f32 to vector<16x1xf32>
    %39 = arith.divf %37, %38 : vector<16x1xf32>
    %40 = vector.broadcast %32 : vector<16x1xf32> to vector<16x32xf32>
    %41 = arith.subf %24, %40 : vector<16x32xf32>
    %cst_17 = arith.constant 9.99999974E-6 : f32
    %42 = vector.broadcast %cst_17 : f32 to vector<16x1xf32>
    %43 = arith.addf %39, %42 : vector<16x1xf32>
    %44 = math.rsqrt %43 : vector<16x1xf32>
    %45 = vector.broadcast %44 : vector<16x1xf32> to vector<16x32xf32>
    %46 = arith.mulf %41, %45 : vector<16x32xf32>
    %47 = vector.broadcast %26 : vector<1x32xf32> to vector<16x32xf32>
    %48 = arith.mulf %46, %47 : vector<16x32xf32>
    %49 = vector.broadcast %28 : vector<1x32xf32> to vector<16x32xf32>
    %50 = arith.addf %48, %49 : vector<16x32xf32>
    %51 = arith.truncf %50 : vector<16x32xf32> to vector<16x32xbf16>
    %c0_18 = arith.constant 0 : index
    %c0_19 = arith.constant 0 : index
    %c0_20 = arith.constant 0 : index
    %52 = vector.load %arg6[%c0_18, %c0_19, %c0_20] : memref<2x32x96xbf16, #tpu.memory_space<vmem>>, vector<1x32x96xbf16>
    %53 = vector.shape_cast %52 : vector<1x32x96xbf16> to vector<32x96xbf16>
    %cst_21 = arith.constant dense<0.000000e+00> : vector<16x96xf32>
    %54 = tpu.matmul %51, %53, %cst_21 {dimension_numbers = #tpu.dot_dimension_numbers<[1], [0], [0], [1], [0, 0, 1, 1], [], []>} : vector<16x32xbf16>, vector<32x96xbf16>, vector<16x96xf32> -> vector<16x96xf32>
    %c0_22 = arith.constant 0 : index
    %c0_23 = arith.constant 0 : index
    %c0_24 = arith.constant 0 : index
    %55 = vector.load %arg7[%c0_22, %c0_23, %c0_24] : memref<2x1x96xf32, #tpu.memory_space<vmem>>, vector<1x1x96xf32>
    %56 = vector.shape_cast %55 : vector<1x1x96xf32> to vector<1x96xf32>
    %57 = vector.broadcast %56 : vector<1x96xf32> to vector<16x96xf32>
    %58 = arith.addf %54, %57 : vector<16x96xf32>
    %59 = arith.truncf %58 : vector<16x96xf32> to vector<16x96xbf16>
    %c0_25 = arith.constant 0 : index
    %c0_26 = arith.constant 0 : index
    %c0_27 = arith.constant 0 : index
    %60 = vector.load %arg8[%c0_25, %c0_26, %c0_27] : memref<2x32x32xbf16, #tpu.memory_space<vmem>>, vector<1x32x32xbf16>
    %61 = vector.shape_cast %60 : vector<1x32x32xbf16> to vector<32x32xbf16>
    %c0_28 = arith.constant 0 : index
    %c0_29 = arith.constant 0 : index
    %c0_30 = arith.constant 0 : index
    %62 = vector.load %arg9[%c0_28, %c0_29, %c0_30] : memref<2x1x32xf32, #tpu.memory_space<vmem>>, vector<1x1x32xf32>
    %63 = vector.shape_cast %62 : vector<1x1x32xf32> to vector<1x32xf32>
    %64 = vector.broadcast %63 : vector<1x32xf32> to vector<16x32xf32>
    %65 = arith.addf %24, %64 : vector<16x32xf32>
    %66 = vector.extract_strided_slice %59 {offsets = [0, 0], sizes = [16, 16], strides = [1, 1]} : vector<16x96xbf16> to vector<16x16xbf16>
    %67 = vector.extract_strided_slice %59 {offsets = [0, 32], sizes = [16, 16], strides = [1, 1]} : vector<16x96xbf16> to vector<16x16xbf16>
    %68 = vector.extract_strided_slice %59 {offsets = [0, 64], sizes = [16, 16], strides = [1, 1]} : vector<16x96xbf16> to vector<16x16xbf16>
    %cst_31 = arith.constant dense<0.000000e+00> : vector<16x16xf32>
    %69 = tpu.matmul %66, %67, %cst_31 {dimension_numbers = #tpu.dot_dimension_numbers<[1], [1], [0], [0], [0, 0, 1, 0], [], []>} : vector<16x16xbf16>, vector<16x16xbf16>, vector<16x16xf32> -> vector<16x16xf32>
    %cst_32 = arith.constant 2.500000e-01 : f32
    %70 = vector.broadcast %cst_32 : f32 to vector<16x16xf32>
    %71 = arith.mulf %69, %70 : vector<16x16xf32>
    %cst_33 = arith.constant dense<0xFF800000> : vector<16xf32>
    %72 = vector.multi_reduction <maximumf>, %71, %cst_33 [1] : vector<16x16xf32> to vector<16xf32>
    %73 = vector.shape_cast %72 : vector<16xf32> to vector<16x1xf32>
    %74 = vector.broadcast %73 : vector<16x1xf32> to vector<16x16xf32>
    %75 = arith.subf %71, %74 : vector<16x16xf32>
    %76 = math.exp %75 : vector<16x16xf32>
    %cst_34 = arith.constant dense<0.000000e+00> : vector<16xf32>
    %77 = vector.multi_reduction <add>, %76, %cst_34 [1] : vector<16x16xf32> to vector<16xf32>
    %78 = vector.shape_cast %77 : vector<16xf32> to vector<16x1xf32>
    %79 = tpu.reciprocal %78 {approx = true} : vector<16x1xf32> -> vector<16x1xf32>
    %80 = vector.broadcast %79 : vector<16x1xf32> to vector<16x16xf32>
    %81 = arith.mulf %76, %80 : vector<16x16xf32>
    %82 = arith.truncf %81 : vector<16x16xf32> to vector<16x16xbf16>
    %cst_35 = arith.constant dense<0.000000e+00> : vector<16x16xf32>
    %83 = tpu.matmul %82, %68, %cst_35 {dimension_numbers = #tpu.dot_dimension_numbers<[1], [0], [0], [1], [0, 0, 1, 1], [], []>} : vector<16x16xbf16>, vector<16x16xbf16>, vector<16x16xf32> -> vector<16x16xf32>
    %84 = arith.truncf %83 : vector<16x16xf32> to vector<16x16xbf16>
    %85 = vector.extract_strided_slice %61 {offsets = [0, 0], sizes = [16, 32], strides = [1, 1]} : vector<32x32xbf16> to vector<16x32xbf16>
    %cst_36 = arith.constant dense<0.000000e+00> : vector<16x32xf32>
    %86 = tpu.matmul %84, %85, %cst_36 {dimension_numbers = #tpu.dot_dimension_numbers<[1], [0], [0], [1], [0, 0, 1, 1], [], []>} : vector<16x16xbf16>, vector<16x32xbf16>, vector<16x32xf32> -> vector<16x32xf32>
    %87 = arith.addf %65, %86 : vector<16x32xf32>
    %88 = vector.extract_strided_slice %59 {offsets = [0, 16], sizes = [16, 16], strides = [1, 1]} : vector<16x96xbf16> to vector<16x16xbf16>
    %89 = vector.extract_strided_slice %59 {offsets = [0, 48], sizes = [16, 16], strides = [1, 1]} : vector<16x96xbf16> to vector<16x16xbf16>
    %90 = vector.extract_strided_slice %59 {offsets = [0, 80], sizes = [16, 16], strides = [1, 1]} : vector<16x96xbf16> to vector<16x16xbf16>
    %cst_37 = arith.constant dense<0.000000e+00> : vector<16x16xf32>
    %91 = tpu.matmul %88, %89, %cst_37 {dimension_numbers = #tpu.dot_dimension_numbers<[1], [1], [0], [0], [0, 0, 1, 0], [], []>} : vector<16x16xbf16>, vector<16x16xbf16>, vector<16x16xf32> -> vector<16x16xf32>
    %cst_38 = arith.constant 2.500000e-01 : f32
    %92 = vector.broadcast %cst_38 : f32 to vector<16x16xf32>
    %93 = arith.mulf %91, %92 : vector<16x16xf32>
    %cst_39 = arith.constant dense<0xFF800000> : vector<16xf32>
    %94 = vector.multi_reduction <maximumf>, %93, %cst_39 [1] : vector<16x16xf32> to vector<16xf32>
    %95 = vector.shape_cast %94 : vector<16xf32> to vector<16x1xf32>
    %96 = vector.broadcast %95 : vector<16x1xf32> to vector<16x16xf32>
    %97 = arith.subf %93, %96 : vector<16x16xf32>
    %98 = math.exp %97 : vector<16x16xf32>
    %cst_40 = arith.constant dense<0.000000e+00> : vector<16xf32>
    %99 = vector.multi_reduction <add>, %98, %cst_40 [1] : vector<16x16xf32> to vector<16xf32>
    %100 = vector.shape_cast %99 : vector<16xf32> to vector<16x1xf32>
    %101 = tpu.reciprocal %100 {approx = true} : vector<16x1xf32> -> vector<16x1xf32>
    %102 = vector.broadcast %101 : vector<16x1xf32> to vector<16x16xf32>
    %103 = arith.mulf %98, %102 : vector<16x16xf32>
    %104 = arith.truncf %103 : vector<16x16xf32> to vector<16x16xbf16>
    %cst_41 = arith.constant dense<0.000000e+00> : vector<16x16xf32>
    %105 = tpu.matmul %104, %90, %cst_41 {dimension_numbers = #tpu.dot_dimension_numbers<[1], [0], [0], [1], [0, 0, 1, 1], [], []>} : vector<16x16xbf16>, vector<16x16xbf16>, vector<16x16xf32> -> vector<16x16xf32>
    %106 = arith.truncf %105 : vector<16x16xf32> to vector<16x16xbf16>
    %107 = vector.extract_strided_slice %61 {offsets = [16, 0], sizes = [16, 32], strides = [1, 1]} : vector<32x32xbf16> to vector<16x32xbf16>
    %cst_42 = arith.constant dense<0.000000e+00> : vector<16x32xf32>
    %108 = tpu.matmul %106, %107, %cst_42 {dimension_numbers = #tpu.dot_dimension_numbers<[1], [0], [0], [1], [0, 0, 1, 1], [], []>} : vector<16x16xbf16>, vector<16x32xbf16>, vector<16x32xf32> -> vector<16x32xf32>
    %109 = arith.addf %87, %108 : vector<16x32xf32>
    %c0_43 = arith.constant 0 : index
    %c0_44 = arith.constant 0 : index
    %c0_45 = arith.constant 0 : index
    %110 = vector.load %arg10[%c0_43, %c0_44, %c0_45] : memref<2x1x32xf32, #tpu.memory_space<vmem>>, vector<1x1x32xf32>
    %111 = vector.shape_cast %110 : vector<1x1x32xf32> to vector<1x32xf32>
    %c0_46 = arith.constant 0 : index
    %c0_47 = arith.constant 0 : index
    %c0_48 = arith.constant 0 : index
    %112 = vector.load %arg11[%c0_46, %c0_47, %c0_48] : memref<2x1x32xf32, #tpu.memory_space<vmem>>, vector<1x1x32xf32>
    %113 = vector.shape_cast %112 : vector<1x1x32xf32> to vector<1x32xf32>
    %cst_49 = arith.constant dense<0.000000e+00> : vector<16xf32>
    %114 = vector.multi_reduction <add>, %109, %cst_49 [1] : vector<16x32xf32> to vector<16xf32>
    %115 = vector.shape_cast %114 : vector<16xf32> to vector<16x1xf32>
    %cst_50 = arith.constant 3.200000e+01 : f32
    %116 = vector.broadcast %cst_50 : f32 to vector<16x1xf32>
    %117 = arith.divf %115, %116 : vector<16x1xf32>
    %118 = vector.broadcast %117 : vector<16x1xf32> to vector<16x32xf32>
    %119 = arith.subf %109, %118 : vector<16x32xf32>
    %120 = arith.mulf %119, %119 : vector<16x32xf32>
    %cst_51 = arith.constant dense<0.000000e+00> : vector<16xf32>
    %121 = vector.multi_reduction <add>, %120, %cst_51 [1] : vector<16x32xf32> to vector<16xf32>
    %122 = vector.shape_cast %121 : vector<16xf32> to vector<16x1xf32>
    %cst_52 = arith.constant 3.200000e+01 : f32
    %123 = vector.broadcast %cst_52 : f32 to vector<16x1xf32>
    %124 = arith.divf %122, %123 : vector<16x1xf32>
    %125 = vector.broadcast %117 : vector<16x1xf32> to vector<16x32xf32>
    %126 = arith.subf %109, %125 : vector<16x32xf32>
    %cst_53 = arith.constant 9.99999974E-6 : f32
    %127 = vector.broadcast %cst_53 : f32 to vector<16x1xf32>
    %128 = arith.addf %124, %127 : vector<16x1xf32>
    %129 = math.rsqrt %128 : vector<16x1xf32>
    %130 = vector.broadcast %129 : vector<16x1xf32> to vector<16x32xf32>
    %131 = arith.mulf %126, %130 : vector<16x32xf32>
    %132 = vector.broadcast %111 : vector<1x32xf32> to vector<16x32xf32>
    %133 = arith.mulf %131, %132 : vector<16x32xf32>
    %134 = vector.broadcast %113 : vector<1x32xf32> to vector<16x32xf32>
    %135 = arith.addf %133, %134 : vector<16x32xf32>
    %136 = arith.truncf %135 : vector<16x32xf32> to vector<16x32xbf16>
    %c0_54 = arith.constant 0 : index
    %c0_55 = arith.constant 0 : index
    %c0_56 = arith.constant 0 : index
    %137 = vector.load %arg12[%c0_54, %c0_55, %c0_56] : memref<2x32x64xbf16, #tpu.memory_space<vmem>>, vector<1x32x64xbf16>
    %138 = vector.shape_cast %137 : vector<1x32x64xbf16> to vector<32x64xbf16>
    %cst_57 = arith.constant dense<0.000000e+00> : vector<16x64xf32>
    %139 = tpu.matmul %136, %138, %cst_57 {dimension_numbers = #tpu.dot_dimension_numbers<[1], [0], [0], [1], [0, 0, 1, 1], [], []>} : vector<16x32xbf16>, vector<32x64xbf16>, vector<16x64xf32> -> vector<16x64xf32>
    %c0_58 = arith.constant 0 : index
    %c0_59 = arith.constant 0 : index
    %c0_60 = arith.constant 0 : index
    %140 = vector.load %arg13[%c0_58, %c0_59, %c0_60] : memref<2x1x64xf32, #tpu.memory_space<vmem>>, vector<1x1x64xf32>
    %141 = vector.shape_cast %140 : vector<1x1x64xf32> to vector<1x64xf32>
    %142 = vector.broadcast %141 : vector<1x64xf32> to vector<16x64xf32>
    %143 = arith.addf %139, %142 : vector<16x64xf32>
    %cst_61 = arith.constant 5.000000e-01 : f32
    %144 = vector.broadcast %cst_61 : f32 to vector<16x64xf32>
    %145 = arith.mulf %144, %143 : vector<16x64xf32>
    %cst_62 = arith.constant 4.471500e-02 : f32
    %146 = vector.broadcast %cst_62 : f32 to vector<16x64xf32>
    %147 = arith.mulf %146, %143 : vector<16x64xf32>
    %148 = arith.mulf %147, %143 : vector<16x64xf32>
    %149 = arith.mulf %148, %143 : vector<16x64xf32>
    %150 = arith.addf %143, %149 : vector<16x64xf32>
    %cst_63 = arith.constant 0.797884583 : f32
    %151 = vector.broadcast %cst_63 : f32 to vector<16x64xf32>
    %152 = arith.mulf %151, %150 : vector<16x64xf32>
    %153 = math.tanh %152 : vector<16x64xf32>
    %cst_64 = arith.constant 1.000000e+00 : f32
    %154 = vector.broadcast %cst_64 : f32 to vector<16x64xf32>
    %155 = arith.addf %154, %153 : vector<16x64xf32>
    %156 = arith.mulf %145, %155 : vector<16x64xf32>
    %157 = arith.truncf %156 : vector<16x64xf32> to vector<16x64xbf16>
    %c0_65 = arith.constant 0 : index
    %c0_66 = arith.constant 0 : index
    %c0_67 = arith.constant 0 : index
    %158 = vector.load %arg14[%c0_65, %c0_66, %c0_67] : memref<2x64x32xbf16, #tpu.memory_space<vmem>>, vector<1x64x32xbf16>
    %159 = vector.shape_cast %158 : vector<1x64x32xbf16> to vector<64x32xbf16>
    %cst_68 = arith.constant dense<0.000000e+00> : vector<16x32xf32>
    %160 = tpu.matmul %157, %159, %cst_68 {dimension_numbers = #tpu.dot_dimension_numbers<[1], [0], [0], [1], [0, 0, 1, 1], [], []>} : vector<16x64xbf16>, vector<64x32xbf16>, vector<16x32xf32> -> vector<16x32xf32>
    %161 = arith.addf %109, %160 : vector<16x32xf32>
    %c0_69 = arith.constant 0 : index
    %c0_70 = arith.constant 0 : index
    %c0_71 = arith.constant 0 : index
    %162 = vector.load %arg15[%c0_69, %c0_70, %c0_71] : memref<2x1x32xf32, #tpu.memory_space<vmem>>, vector<1x1x32xf32>
    %163 = vector.shape_cast %162 : vector<1x1x32xf32> to vector<1x32xf32>
    %164 = vector.broadcast %163 : vector<1x32xf32> to vector<16x32xf32>
    %165 = arith.addf %161, %164 : vector<16x32xf32>
    %c1 = arith.constant 1 : index
    %c0_72 = arith.constant 0 : index
    %c0_73 = arith.constant 0 : index
    %166 = vector.load %arg4[%c1, %c0_72, %c0_73] : memref<2x1x32xf32, #tpu.memory_space<vmem>>, vector<1x1x32xf32>
    %167 = vector.shape_cast %166 : vector<1x1x32xf32> to vector<1x32xf32>
    %c1_74 = arith.constant 1 : index
    %c0_75 = arith.constant 0 : index
    %c0_76 = arith.constant 0 : index
    %168 = vector.load %arg5[%c1_74, %c0_75, %c0_76] : memref<2x1x32xf32, #tpu.memory_space<vmem>>, vector<1x1x32xf32>
    %169 = vector.shape_cast %168 : vector<1x1x32xf32> to vector<1x32xf32>
    %cst_77 = arith.constant dense<0.000000e+00> : vector<16xf32>
    %170 = vector.multi_reduction <add>, %165, %cst_77 [1] : vector<16x32xf32> to vector<16xf32>
    %171 = vector.shape_cast %170 : vector<16xf32> to vector<16x1xf32>
    %cst_78 = arith.constant 3.200000e+01 : f32
    %172 = vector.broadcast %cst_78 : f32 to vector<16x1xf32>
    %173 = arith.divf %171, %172 : vector<16x1xf32>
    %174 = vector.broadcast %173 : vector<16x1xf32> to vector<16x32xf32>
    %175 = arith.subf %165, %174 : vector<16x32xf32>
    %176 = arith.mulf %175, %175 : vector<16x32xf32>
    %cst_79 = arith.constant dense<0.000000e+00> : vector<16xf32>
    %177 = vector.multi_reduction <add>, %176, %cst_79 [1] : vector<16x32xf32> to vector<16xf32>
    %178 = vector.shape_cast %177 : vector<16xf32> to vector<16x1xf32>
    %cst_80 = arith.constant 3.200000e+01 : f32
    %179 = vector.broadcast %cst_80 : f32 to vector<16x1xf32>
    %180 = arith.divf %178, %179 : vector<16x1xf32>
    %181 = vector.broadcast %173 : vector<16x1xf32> to vector<16x32xf32>
    %182 = arith.subf %165, %181 : vector<16x32xf32>
    %cst_81 = arith.constant 9.99999974E-6 : f32
    %183 = vector.broadcast %cst_81 : f32 to vector<16x1xf32>
    %184 = arith.addf %180, %183 : vector<16x1xf32>
    %185 = math.rsqrt %184 : vector<16x1xf32>
    %186 = vector.broadcast %185 : vector<16x1xf32> to vector<16x32xf32>
    %187 = arith.mulf %182, %186 : vector<16x32xf32>
    %188 = vector.broadcast %167 : vector<1x32xf32> to vector<16x32xf32>
    %189 = arith.mulf %187, %188 : vector<16x32xf32>
    %190 = vector.broadcast %169 : vector<1x32xf32> to vector<16x32xf32>
    %191 = arith.addf %189, %190 : vector<16x32xf32>
    %192 = arith.truncf %191 : vector<16x32xf32> to vector<16x32xbf16>
    %c1_82 = arith.constant 1 : index
    %c0_83 = arith.constant 0 : index
    %c0_84 = arith.constant 0 : index
    %193 = vector.load %arg6[%c1_82, %c0_83, %c0_84] : memref<2x32x96xbf16, #tpu.memory_space<vmem>>, vector<1x32x96xbf16>
    %194 = vector.shape_cast %193 : vector<1x32x96xbf16> to vector<32x96xbf16>
    %cst_85 = arith.constant dense<0.000000e+00> : vector<16x96xf32>
    %195 = tpu.matmul %192, %194, %cst_85 {dimension_numbers = #tpu.dot_dimension_numbers<[1], [0], [0], [1], [0, 0, 1, 1], [], []>} : vector<16x32xbf16>, vector<32x96xbf16>, vector<16x96xf32> -> vector<16x96xf32>
    %c1_86 = arith.constant 1 : index
    %c0_87 = arith.constant 0 : index
    %c0_88 = arith.constant 0 : index
    %196 = vector.load %arg7[%c1_86, %c0_87, %c0_88] : memref<2x1x96xf32, #tpu.memory_space<vmem>>, vector<1x1x96xf32>
    %197 = vector.shape_cast %196 : vector<1x1x96xf32> to vector<1x96xf32>
    %198 = vector.broadcast %197 : vector<1x96xf32> to vector<16x96xf32>
    %199 = arith.addf %195, %198 : vector<16x96xf32>
    %200 = arith.truncf %199 : vector<16x96xf32> to vector<16x96xbf16>
    %c1_89 = arith.constant 1 : index
    %c0_90 = arith.constant 0 : index
    %c0_91 = arith.constant 0 : index
    %201 = vector.load %arg8[%c1_89, %c0_90, %c0_91] : memref<2x32x32xbf16, #tpu.memory_space<vmem>>, vector<1x32x32xbf16>
    %202 = vector.shape_cast %201 : vector<1x32x32xbf16> to vector<32x32xbf16>
    %c1_92 = arith.constant 1 : index
    %c0_93 = arith.constant 0 : index
    %c0_94 = arith.constant 0 : index
    %203 = vector.load %arg9[%c1_92, %c0_93, %c0_94] : memref<2x1x32xf32, #tpu.memory_space<vmem>>, vector<1x1x32xf32>
    %204 = vector.shape_cast %203 : vector<1x1x32xf32> to vector<1x32xf32>
    %205 = vector.broadcast %204 : vector<1x32xf32> to vector<16x32xf32>
    %206 = arith.addf %165, %205 : vector<16x32xf32>
    %207 = vector.extract_strided_slice %200 {offsets = [0, 0], sizes = [16, 16], strides = [1, 1]} : vector<16x96xbf16> to vector<16x16xbf16>
    %208 = vector.extract_strided_slice %200 {offsets = [0, 32], sizes = [16, 16], strides = [1, 1]} : vector<16x96xbf16> to vector<16x16xbf16>
    %209 = vector.extract_strided_slice %200 {offsets = [0, 64], sizes = [16, 16], strides = [1, 1]} : vector<16x96xbf16> to vector<16x16xbf16>
    %cst_95 = arith.constant dense<0.000000e+00> : vector<16x16xf32>
    %210 = tpu.matmul %207, %208, %cst_95 {dimension_numbers = #tpu.dot_dimension_numbers<[1], [1], [0], [0], [0, 0, 1, 0], [], []>} : vector<16x16xbf16>, vector<16x16xbf16>, vector<16x16xf32> -> vector<16x16xf32>
    %cst_96 = arith.constant 2.500000e-01 : f32
    %211 = vector.broadcast %cst_96 : f32 to vector<16x16xf32>
    %212 = arith.mulf %210, %211 : vector<16x16xf32>
    %cst_97 = arith.constant dense<0xFF800000> : vector<16xf32>
    %213 = vector.multi_reduction <maximumf>, %212, %cst_97 [1] : vector<16x16xf32> to vector<16xf32>
    %214 = vector.shape_cast %213 : vector<16xf32> to vector<16x1xf32>
    %215 = vector.broadcast %214 : vector<16x1xf32> to vector<16x16xf32>
    %216 = arith.subf %212, %215 : vector<16x16xf32>
    %217 = math.exp %216 : vector<16x16xf32>
    %cst_98 = arith.constant dense<0.000000e+00> : vector<16xf32>
    %218 = vector.multi_reduction <add>, %217, %cst_98 [1] : vector<16x16xf32> to vector<16xf32>
    %219 = vector.shape_cast %218 : vector<16xf32> to vector<16x1xf32>
    %220 = tpu.reciprocal %219 {approx = true} : vector<16x1xf32> -> vector<16x1xf32>
    %221 = vector.broadcast %220 : vector<16x1xf32> to vector<16x16xf32>
    %222 = arith.mulf %217, %221 : vector<16x16xf32>
    %223 = arith.truncf %222 : vector<16x16xf32> to vector<16x16xbf16>
    %cst_99 = arith.constant dense<0.000000e+00> : vector<16x16xf32>
    %224 = tpu.matmul %223, %209, %cst_99 {dimension_numbers = #tpu.dot_dimension_numbers<[1], [0], [0], [1], [0, 0, 1, 1], [], []>} : vector<16x16xbf16>, vector<16x16xbf16>, vector<16x16xf32> -> vector<16x16xf32>
    %225 = arith.truncf %224 : vector<16x16xf32> to vector<16x16xbf16>
    %226 = vector.extract_strided_slice %202 {offsets = [0, 0], sizes = [16, 32], strides = [1, 1]} : vector<32x32xbf16> to vector<16x32xbf16>
    %cst_100 = arith.constant dense<0.000000e+00> : vector<16x32xf32>
    %227 = tpu.matmul %225, %226, %cst_100 {dimension_numbers = #tpu.dot_dimension_numbers<[1], [0], [0], [1], [0, 0, 1, 1], [], []>} : vector<16x16xbf16>, vector<16x32xbf16>, vector<16x32xf32> -> vector<16x32xf32>
    %228 = arith.addf %206, %227 : vector<16x32xf32>
    %229 = vector.extract_strided_slice %200 {offsets = [0, 16], sizes = [16, 16], strides = [1, 1]} : vector<16x96xbf16> to vector<16x16xbf16>
    %230 = vector.extract_strided_slice %200 {offsets = [0, 48], sizes = [16, 16], strides = [1, 1]} : vector<16x96xbf16> to vector<16x16xbf16>
    %231 = vector.extract_strided_slice %200 {offsets = [0, 80], sizes = [16, 16], strides = [1, 1]} : vector<16x96xbf16> to vector<16x16xbf16>
    %cst_101 = arith.constant dense<0.000000e+00> : vector<16x16xf32>
    %232 = tpu.matmul %229, %230, %cst_101 {dimension_numbers = #tpu.dot_dimension_numbers<[1], [1], [0], [0], [0, 0, 1, 0], [], []>} : vector<16x16xbf16>, vector<16x16xbf16>, vector<16x16xf32> -> vector<16x16xf32>
    %cst_102 = arith.constant 2.500000e-01 : f32
    %233 = vector.broadcast %cst_102 : f32 to vector<16x16xf32>
    %234 = arith.mulf %232, %233 : vector<16x16xf32>
    %cst_103 = arith.constant dense<0xFF800000> : vector<16xf32>
    %235 = vector.multi_reduction <maximumf>, %234, %cst_103 [1] : vector<16x16xf32> to vector<16xf32>
    %236 = vector.shape_cast %235 : vector<16xf32> to vector<16x1xf32>
    %237 = vector.broadcast %236 : vector<16x1xf32> to vector<16x16xf32>
    %238 = arith.subf %234, %237 : vector<16x16xf32>
    %239 = math.exp %238 : vector<16x16xf32>
    %cst_104 = arith.constant dense<0.000000e+00> : vector<16xf32>
    %240 = vector.multi_reduction <add>, %239, %cst_104 [1] : vector<16x16xf32> to vector<16xf32>
    %241 = vector.shape_cast %240 : vector<16xf32> to vector<16x1xf32>
    %242 = tpu.reciprocal %241 {approx = true} : vector<16x1xf32> -> vector<16x1xf32>
    %243 = vector.broadcast %242 : vector<16x1xf32> to vector<16x16xf32>
    %244 = arith.mulf %239, %243 : vector<16x16xf32>
    %245 = arith.truncf %244 : vector<16x16xf32> to vector<16x16xbf16>
    %cst_105 = arith.constant dense<0.000000e+00> : vector<16x16xf32>
    %246 = tpu.matmul %245, %231, %cst_105 {dimension_numbers = #tpu.dot_dimension_numbers<[1], [0], [0], [1], [0, 0, 1, 1], [], []>} : vector<16x16xbf16>, vector<16x16xbf16>, vector<16x16xf32> -> vector<16x16xf32>
    %247 = arith.truncf %246 : vector<16x16xf32> to vector<16x16xbf16>
    %248 = vector.extract_strided_slice %202 {offsets = [16, 0], sizes = [16, 32], strides = [1, 1]} : vector<32x32xbf16> to vector<16x32xbf16>
    %cst_106 = arith.constant dense<0.000000e+00> : vector<16x32xf32>
    %249 = tpu.matmul %247, %248, %cst_106 {dimension_numbers = #tpu.dot_dimension_numbers<[1], [0], [0], [1], [0, 0, 1, 1], [], []>} : vector<16x16xbf16>, vector<16x32xbf16>, vector<16x32xf32> -> vector<16x32xf32>
    %250 = arith.addf %228, %249 : vector<16x32xf32>
    %c1_107 = arith.constant 1 : index
    %c0_108 = arith.constant 0 : index
    %c0_109 = arith.constant 0 : index
    %251 = vector.load %arg10[%c1_107, %c0_108, %c0_109] : memref<2x1x32xf32, #tpu.memory_space<vmem>>, vector<1x1x32xf32>
    %252 = vector.shape_cast %251 : vector<1x1x32xf32> to vector<1x32xf32>
    %c1_110 = arith.constant 1 : index
    %c0_111 = arith.constant 0 : index
    %c0_112 = arith.constant 0 : index
    %253 = vector.load %arg11[%c1_110, %c0_111, %c0_112] : memref<2x1x32xf32, #tpu.memory_space<vmem>>, vector<1x1x32xf32>
    %254 = vector.shape_cast %253 : vector<1x1x32xf32> to vector<1x32xf32>
    %cst_113 = arith.constant dense<0.000000e+00> : vector<16xf32>
    %255 = vector.multi_reduction <add>, %250, %cst_113 [1] : vector<16x32xf32> to vector<16xf32>
    %256 = vector.shape_cast %255 : vector<16xf32> to vector<16x1xf32>
    %cst_114 = arith.constant 3.200000e+01 : f32
    %257 = vector.broadcast %cst_114 : f32 to vector<16x1xf32>
    %258 = arith.divf %256, %257 : vector<16x1xf32>
    %259 = vector.broadcast %258 : vector<16x1xf32> to vector<16x32xf32>
    %260 = arith.subf %250, %259 : vector<16x32xf32>
    %261 = arith.mulf %260, %260 : vector<16x32xf32>
    %cst_115 = arith.constant dense<0.000000e+00> : vector<16xf32>
    %262 = vector.multi_reduction <add>, %261, %cst_115 [1] : vector<16x32xf32> to vector<16xf32>
    %263 = vector.shape_cast %262 : vector<16xf32> to vector<16x1xf32>
    %cst_116 = arith.constant 3.200000e+01 : f32
    %264 = vector.broadcast %cst_116 : f32 to vector<16x1xf32>
    %265 = arith.divf %263, %264 : vector<16x1xf32>
    %266 = vector.broadcast %258 : vector<16x1xf32> to vector<16x32xf32>
    %267 = arith.subf %250, %266 : vector<16x32xf32>
    %cst_117 = arith.constant 9.99999974E-6 : f32
    %268 = vector.broadcast %cst_117 : f32 to vector<16x1xf32>
    %269 = arith.addf %265, %268 : vector<16x1xf32>
    %270 = math.rsqrt %269 : vector<16x1xf32>
    %271 = vector.broadcast %270 : vector<16x1xf32> to vector<16x32xf32>
    %272 = arith.mulf %267, %271 : vector<16x32xf32>
    %273 = vector.broadcast %252 : vector<1x32xf32> to vector<16x32xf32>
    %274 = arith.mulf %272, %273 : vector<16x32xf32>
    %275 = vector.broadcast %254 : vector<1x32xf32> to vector<16x32xf32>
    %276 = arith.addf %274, %275 : vector<16x32xf32>
    %277 = arith.truncf %276 : vector<16x32xf32> to vector<16x32xbf16>
    %c1_118 = arith.constant 1 : index
    %c0_119 = arith.constant 0 : index
    %c0_120 = arith.constant 0 : index
    %278 = vector.load %arg12[%c1_118, %c0_119, %c0_120] : memref<2x32x64xbf16, #tpu.memory_space<vmem>>, vector<1x32x64xbf16>
    %279 = vector.shape_cast %278 : vector<1x32x64xbf16> to vector<32x64xbf16>
    %cst_121 = arith.constant dense<0.000000e+00> : vector<16x64xf32>
    %280 = tpu.matmul %277, %279, %cst_121 {dimension_numbers = #tpu.dot_dimension_numbers<[1], [0], [0], [1], [0, 0, 1, 1], [], []>} : vector<16x32xbf16>, vector<32x64xbf16>, vector<16x64xf32> -> vector<16x64xf32>
    %c1_122 = arith.constant 1 : index
    %c0_123 = arith.constant 0 : index
    %c0_124 = arith.constant 0 : index
    %281 = vector.load %arg13[%c1_122, %c0_123, %c0_124] : memref<2x1x64xf32, #tpu.memory_space<vmem>>, vector<1x1x64xf32>
    %282 = vector.shape_cast %281 : vector<1x1x64xf32> to vector<1x64xf32>
    %283 = vector.broadcast %282 : vector<1x64xf32> to vector<16x64xf32>
    %284 = arith.addf %280, %283 : vector<16x64xf32>
    %cst_125 = arith.constant 5.000000e-01 : f32
    %285 = vector.broadcast %cst_125 : f32 to vector<16x64xf32>
    %286 = arith.mulf %285, %284 : vector<16x64xf32>
    %cst_126 = arith.constant 4.471500e-02 : f32
    %287 = vector.broadcast %cst_126 : f32 to vector<16x64xf32>
    %288 = arith.mulf %287, %284 : vector<16x64xf32>
    %289 = arith.mulf %288, %284 : vector<16x64xf32>
    %290 = arith.mulf %289, %284 : vector<16x64xf32>
    %291 = arith.addf %284, %290 : vector<16x64xf32>
    %cst_127 = arith.constant 0.797884583 : f32
    %292 = vector.broadcast %cst_127 : f32 to vector<16x64xf32>
    %293 = arith.mulf %292, %291 : vector<16x64xf32>
    %294 = math.tanh %293 : vector<16x64xf32>
    %cst_128 = arith.constant 1.000000e+00 : f32
    %295 = vector.broadcast %cst_128 : f32 to vector<16x64xf32>
    %296 = arith.addf %295, %294 : vector<16x64xf32>
    %297 = arith.mulf %286, %296 : vector<16x64xf32>
    %298 = arith.truncf %297 : vector<16x64xf32> to vector<16x64xbf16>
    %c1_129 = arith.constant 1 : index
    %c0_130 = arith.constant 0 : index
    %c0_131 = arith.constant 0 : index
    %299 = vector.load %arg14[%c1_129, %c0_130, %c0_131] : memref<2x64x32xbf16, #tpu.memory_space<vmem>>, vector<1x64x32xbf16>
    %300 = vector.shape_cast %299 : vector<1x64x32xbf16> to vector<64x32xbf16>
    %cst_132 = arith.constant dense<0.000000e+00> : vector<16x32xf32>
    %301 = tpu.matmul %298, %300, %cst_132 {dimension_numbers = #tpu.dot_dimension_numbers<[1], [0], [0], [1], [0, 0, 1, 1], [], []>} : vector<16x64xbf16>, vector<64x32xbf16>, vector<16x32xf32> -> vector<16x32xf32>
    %302 = arith.addf %250, %301 : vector<16x32xf32>
    %c1_133 = arith.constant 1 : index
    %c0_134 = arith.constant 0 : index
    %c0_135 = arith.constant 0 : index
    %303 = vector.load %arg15[%c1_133, %c0_134, %c0_135] : memref<2x1x32xf32, #tpu.memory_space<vmem>>, vector<1x1x32xf32>
    %304 = vector.shape_cast %303 : vector<1x1x32xf32> to vector<1x32xf32>
    %305 = vector.broadcast %304 : vector<1x32xf32> to vector<16x32xf32>
    %306 = arith.addf %302, %305 : vector<16x32xf32>
    %c0_136 = arith.constant 0 : index
    %c0_137 = arith.constant 0 : index
    %307 = vector.load %arg16[%c0_136, %c0_137] : memref<1x32xf32, #tpu.memory_space<vmem>>, vector<1x32xf32>
    %c0_138 = arith.constant 0 : index
    %c0_139 = arith.constant 0 : index
    %308 = vector.load %arg17[%c0_138, %c0_139] : memref<1x32xf32, #tpu.memory_space<vmem>>, vector<1x32xf32>
    %cst_140 = arith.constant dense<0.000000e+00> : vector<16xf32>
    %309 = vector.multi_reduction <add>, %306, %cst_140 [1] : vector<16x32xf32> to vector<16xf32>
    %310 = vector.shape_cast %309 : vector<16xf32> to vector<16x1xf32>
    %cst_141 = arith.constant 3.200000e+01 : f32
    %311 = vector.broadcast %cst_141 : f32 to vector<16x1xf32>
    %312 = arith.divf %310, %311 : vector<16x1xf32>
    %313 = vector.broadcast %312 : vector<16x1xf32> to vector<16x32xf32>
    %314 = arith.subf %306, %313 : vector<16x32xf32>
    %315 = arith.mulf %314, %314 : vector<16x32xf32>
    %cst_142 = arith.constant dense<0.000000e+00> : vector<16xf32>
    %316 = vector.multi_reduction <add>, %315, %cst_142 [1] : vector<16x32xf32> to vector<16xf32>
    %317 = vector.shape_cast %316 : vector<16xf32> to vector<16x1xf32>
    %cst_143 = arith.constant 3.200000e+01 : f32
    %318 = vector.broadcast %cst_143 : f32 to vector<16x1xf32>
    %319 = arith.divf %317, %318 : vector<16x1xf32>
    %320 = vector.broadcast %312 : vector<16x1xf32> to vector<16x32xf32>
    %321 = arith.subf %306, %320 : vector<16x32xf32>
    %cst_144 = arith.constant 9.99999974E-6 : f32
    %322 = vector.broadcast %cst_144 : f32 to vector<16x1xf32>
    %323 = arith.addf %319, %322 : vector<16x1xf32>
    %324 = math.rsqrt %323 : vector<16x1xf32>
    %325 = vector.broadcast %324 : vector<16x1xf32> to vector<16x32xf32>
    %326 = arith.mulf %321, %325 : vector<16x32xf32>
    %327 = vector.broadcast %307 : vector<1x32xf32> to vector<16x32xf32>
    %328 = arith.mulf %326, %327 : vector<16x32xf32>
    %329 = vector.broadcast %308 : vector<1x32xf32> to vector<16x32xf32>
    %330 = arith.addf %328, %329 : vector<16x32xf32>
    %331 = arith.truncf %330 : vector<16x32xf32> to vector<16x32xbf16>
    %c0_145 = arith.constant 0 : index
    %c0_146 = arith.constant 0 : index
    %332 = vector.load %arg18[%c0_145, %c0_146] : memref<1x32xbf16, #tpu.memory_space<vmem>>, vector<1x32xbf16>
    %cst_147 = arith.constant dense<0.000000e+00> : vector<1x16xf32>
    %333 = tpu.matmul %332, %331, %cst_147 {dimension_numbers = #tpu.dot_dimension_numbers<[1], [1], [0], [0], [0, 0, 1, 0], [], []>} : vector<1x32xbf16>, vector<16x32xbf16>, vector<1x16xf32> -> vector<1x16xf32>
    %c0_148 = arith.constant 0 : index
    %c0_149 = arith.constant 0 : index
    %334 = vector.load %arg19[%c0_148, %c0_149] : memref<1x1xf32, #tpu.memory_space<vmem>>, vector<1x1xf32>
    %335 = vector.broadcast %334 : vector<1x1xf32> to vector<1x16xf32>
    %336 = arith.addf %333, %335 : vector<1x16xf32>
    %cst_150 = arith.constant dense<0xFF800000> : vector<1xf32>
    %337 = vector.multi_reduction <maximumf>, %336, %cst_150 [1] : vector<1x16xf32> to vector<1xf32>
    %338 = vector.shape_cast %337 : vector<1xf32> to vector<1x1xf32>
    %339 = vector.broadcast %338 : vector<1x1xf32> to vector<1x16xf32>
    %340 = arith.subf %336, %339 : vector<1x16xf32>
    %341 = math.exp %340 : vector<1x16xf32>
    %cst_151 = arith.constant dense<0.000000e+00> : vector<1xf32>
    %342 = vector.multi_reduction <add>, %341, %cst_151 [1] : vector<1x16xf32> to vector<1xf32>
    %343 = vector.shape_cast %342 : vector<1xf32> to vector<1x1xf32>
    %344 = tpu.reciprocal %343 {approx = true} : vector<1x1xf32> -> vector<1x1xf32>
    %345 = vector.broadcast %344 : vector<1x1xf32> to vector<1x16xf32>
    %346 = arith.mulf %341, %345 : vector<1x16xf32>
    %347 = arith.truncf %346 : vector<1x16xf32> to vector<1x16xbf16>
    %cst_152 = arith.constant dense<0.000000e+00> : vector<1x32xf32>
    %348 = tpu.matmul %347, %331, %cst_152 {dimension_numbers = #tpu.dot_dimension_numbers<[1], [0], [0], [1], [0, 0, 1, 1], [], []>} : vector<1x16xbf16>, vector<16x32xbf16>, vector<1x32xf32> -> vector<1x32xf32>
    %349 = arith.truncf %348 : vector<1x32xf32> to vector<1x32xbf16>
    %c0_153 = arith.constant 0 : index
    %c0_154 = arith.constant 0 : index
    %350 = vector.load %arg20[%c0_153, %c0_154] : memref<32x128xbf16, #tpu.memory_space<vmem>>, vector<32x128xbf16>
    %cst_155 = arith.constant dense<0.000000e+00> : vector<1x128xf32>
    %351 = tpu.matmul %349, %350, %cst_155 {dimension_numbers = #tpu.dot_dimension_numbers<[1], [0], [0], [1], [0, 0, 1, 1], [], []>} : vector<1x32xbf16>, vector<32x128xbf16>, vector<1x128xf32> -> vector<1x128xf32>
    %c0_156 = arith.constant 0 : index
    %c0_157 = arith.constant 0 : index
    %352 = vector.load %arg21[%c0_156, %c0_157] : memref<1x128xf32, #tpu.memory_space<vmem>>, vector<1x128xf32>
    %353 = arith.addf %351, %352 : vector<1x128xf32>
    %c0_158 = arith.constant 0 : index
    %c0_159 = arith.constant 0 : index
    %c0_160 = arith.constant 0 : index
    %354 = vector.load %arg22[%c0_158, %c0_159, %c0_160] : memref<1x1x128xf32, #tpu.memory_space<vmem>>, vector<1x1x128xf32>
    %355 = vector.shape_cast %354 : vector<1x1x128xf32> to vector<1x128xf32>
    %356 = vector.shape_cast %353 : vector<1x128xf32> to vector<1x1x128xf32>
    tpu.vector_store %arg22[%c0_158, %c0_159, %c0_160], %356 {strides = array<i32>} : memref<1x1x128xf32, #tpu.memory_space<vmem>>, vector<1x1x128xf32>,
    %c0_161 = arith.constant 0 : index
    %c0_162 = arith.constant 0 : index
    %c0_163 = arith.constant 0 : index
    %357 = vector.load %arg23[%c0_161, %c0_162, %c0_163] : memref<1x1x32xf32, #tpu.memory_space<vmem>>, vector<1x1x32xf32>
    %358 = vector.shape_cast %357 : vector<1x1x32xf32> to vector<1x32xf32>
    %359 = vector.shape_cast %348 : vector<1x32xf32> to vector<1x1x32xf32>
    tpu.vector_store %arg23[%c0_161, %c0_162, %c0_163], %359 {strides = array<i32>} : memref<1x1x32xf32, #tpu.memory_space<vmem>>, vector<1x1x32xf32>,
    return
  }
  func.func @transform_0(%arg0: i32) -> (i32, i32, i32) {
    %c0_i32 = arith.constant 0 : i32
    %c0_i32_0 = arith.constant 0 : i32
    %c0_i32_1 = arith.constant 0 : i32
    return %arg0, %c0_i32, %c0_i32_0 : i32, i32, i32
  }
  func.func @transform_1(%arg0: i32) -> (i32, i32) {
    %c0_i32 = arith.constant 0 : i32
    %c0_i32_0 = arith.constant 0 : i32
    %c0_i32_1 = arith.constant 0 : i32
    return %c0_i32, %c0_i32_0 : i32, i32
  }
  func.func @transform_2(%arg0: i32) -> (i32, i32) {
    %c0_i32 = arith.constant 0 : i32
    %c0_i32_0 = arith.constant 0 : i32
    %c0_i32_1 = arith.constant 0 : i32
    return %c0_i32, %c0_i32_0 : i32, i32
  }
  func.func @transform_3(%arg0: i32) -> (i32, i32, i32) {
    %c0_i32 = arith.constant 0 : i32
    %c0_i32_0 = arith.constant 0 : i32
    %c0_i32_1 = arith.constant 0 : i32
    %c0_i32_2 = arith.constant 0 : i32
    return %c0_i32, %c0_i32_0, %c0_i32_1 : i32, i32, i32
  }
  func.func @transform_4(%arg0: i32) -> (i32, i32, i32) {
    %c0_i32 = arith.constant 0 : i32
    %c0_i32_0 = arith.constant 0 : i32
    %c0_i32_1 = arith.constant 0 : i32
    %c0_i32_2 = arith.constant 0 : i32
    return %c0_i32, %c0_i32_0, %c0_i32_1 : i32, i32, i32
  }
  func.func @transform_5(%arg0: i32) -> (i32, i32, i32) {
    %c0_i32 = arith.constant 0 : i32
    %c0_i32_0 = arith.constant 0 : i32
    %c0_i32_1 = arith.constant 0 : i32
    %c0_i32_2 = arith.constant 0 : i32
    return %c0_i32, %c0_i32_0, %c0_i32_1 : i32, i32, i32
  }
  func.func @transform_6(%arg0: i32) -> (i32, i32, i32) {
    %c0_i32 = arith.constant 0 : i32
    %c0_i32_0 = arith.constant 0 : i32
    %c0_i32_1 = arith.constant 0 : i32
    %c0_i32_2 = arith.constant 0 : i32
    return %c0_i32, %c0_i32_0, %c0_i32_1 : i32, i32, i32
  }
  func.func @transform_7(%arg0: i32) -> (i32, i32, i32) {
    %c0_i32 = arith.constant 0 : i32
    %c0_i32_0 = arith.constant 0 : i32
    %c0_i32_1 = arith.constant 0 : i32
    %c0_i32_2 = arith.constant 0 : i32
    return %c0_i32, %c0_i32_0, %c0_i32_1 : i32, i32, i32
  }
  func.func @transform_8(%arg0: i32) -> (i32, i32, i32) {
    %c0_i32 = arith.constant 0 : i32
    %c0_i32_0 = arith.constant 0 : i32
    %c0_i32_1 = arith.constant 0 : i32
    %c0_i32_2 = arith.constant 0 : i32
    return %c0_i32, %c0_i32_0, %c0_i32_1 : i32, i32, i32
  }
  func.func @transform_9(%arg0: i32) -> (i32, i32, i32) {
    %c0_i32 = arith.constant 0 : i32
    %c0_i32_0 = arith.constant 0 : i32
    %c0_i32_1 = arith.constant 0 : i32
    %c0_i32_2 = arith.constant 0 : i32
    return %c0_i32, %c0_i32_0, %c0_i32_1 : i32, i32, i32
  }
  func.func @transform_10(%arg0: i32) -> (i32, i32, i32) {
    %c0_i32 = arith.constant 0 : i32
    %c0_i32_0 = arith.constant 0 : i32
    %c0_i32_1 = arith.constant 0 : i32
    %c0_i32_2 = arith.constant 0 : i32
    return %c0_i32, %c0_i32_0, %c0_i32_1 : i32, i32, i32
  }
  func.func @transform_11(%arg0: i32) -> (i32, i32, i32) {
    %c0_i32 = arith.constant 0 : i32
    %c0_i32_0 = arith.constant 0 : i32
    %c0_i32_1 = arith.constant 0 : i32
    %c0_i32_2 = arith.constant 0 : i32
    return %c0_i32, %c0_i32_0, %c0_i32_1 : i32, i32, i32
  }
  func.func @transform_12(%arg0: i32) -> (i32, i32, i32) {
    %c0_i32 = arith.constant 0 : i32
    %c0_i32_0 = arith.constant 0 : i32
    %c0_i32_1 = arith.constant 0 : i32
    %c0_i32_2 = arith.constant 0 : i32
    return %c0_i32, %c0_i32_0, %c0_i32_1 : i32, i32, i32
  }
  func.func @transform_13(%arg0: i32) -> (i32, i32, i32) {
    %c0_i32 = arith.constant 0 : i32
    %c0_i32_0 = arith.constant 0 : i32
    %c0_i32_1 = arith.constant 0 : i32
    %c0_i32_2 = arith.constant 0 : i32
    return %c0_i32, %c0_i32_0, %c0_i32_1 : i32, i32, i32
  }
  func.func @transform_14(%arg0: i32) -> (i32, i32, i32) {
    %c0_i32 = arith.constant 0 : i32
    %c0_i32_0 = arith.constant 0 : i32
    %c0_i32_1 = arith.constant 0 : i32
    %c0_i32_2 = arith.constant 0 : i32
    return %c0_i32, %c0_i32_0, %c0_i32_1 : i32, i32, i32
  }
  func.func @transform_15(%arg0: i32) -> (i32, i32) {
    %c0_i32 = arith.constant 0 : i32
    %c0_i32_0 = arith.constant 0 : i32
    %c0_i32_1 = arith.constant 0 : i32
    return %c0_i32, %c0_i32_0 : i32, i32
  }
  func.func @transform_16(%arg0: i32) -> (i32, i32) {
    %c0_i32 = arith.constant 0 : i32
    %c0_i32_0 = arith.constant 0 : i32
    %c0_i32_1 = arith.constant 0 : i32
    return %c0_i32, %c0_i32_0 : i32, i32
  }
  func.func @transform_17(%arg0: i32) -> (i32, i32) {
    %c0_i32 = arith.constant 0 : i32
    %c0_i32_0 = arith.constant 0 : i32
    %c0_i32_1 = arith.constant 0 : i32
    return %c0_i32, %c0_i32_0 : i32, i32
  }
  func.func @transform_18(%arg0: i32) -> (i32, i32) {
    %c0_i32 = arith.constant 0 : i32
    %c0_i32_0 = arith.constant 0 : i32
    %c0_i32_1 = arith.constant 0 : i32
    return %c0_i32, %c0_i32_0 : i32, i32
  }
  func.func @transform_19(%arg0: i32) -> (i32, i32) {
    %c0_i32 = arith.constant 0 : i32
    %c0_i32_0 = arith.constant 0 : i32
    %c0_i32_1 = arith.constant 0 : i32
    return %c0_i32, %c0_i32_0 : i32, i32
  }
  func.func @transform_20(%arg0: i32) -> (i32, i32) {
    %c0_i32 = arith.constant 0 : i32
    %c0_i32_0 = arith.constant 0 : i32
    %c0_i32_1 = arith.constant 0 : i32
    return %c0_i32, %c0_i32_0 : i32, i32
  }
  func.func @transform_21(%arg0: i32) -> (i32, i32, i32) {
    %c0_i32 = arith.constant 0 : i32
    %c0_i32_0 = arith.constant 0 : i32
    %c0_i32_1 = arith.constant 0 : i32
    return %arg0, %c0_i32, %c0_i32_0 : i32, i32, i32
  }
  func.func @transform_22(%arg0: i32) -> (i32, i32, i32) {
    %c0_i32 = arith.constant 0 : i32
    %c0_i32_0 = arith.constant 0 : i32
    %c0_i32_1 = arith.constant 0 : i32
    return %arg0, %c0_i32, %c0_i32_0 : i32, i32, i32
  }
}

</mosaic_0001>

<bundles_post_ra>
// kernel: cct_forward.1
= control target key start
LH: loop header
LB: loop body
LE: loop exit
PB: predicated region body
PF: predicated region fallthrough
CT: control target
= control target key end

     0   :  { %s4065_s0 = inlined_call_operand.vmem [shape: bf16[2,144,147], index: 0, kind: input, shape index: {}]   ;;  %s4066_s1 = inlined_call_operand.vmem [shape: bf16[147,32], index: 1, kind: input, shape index: {}]   ;;  %s4067_s2 = inlined_call_operand.vmem [shape: f32[16,32], index: 2, kind: input, shape index: {}]   ;;  %s4068_s3 = inlined_call_operand.vmem [shape: f32[2,1,32], index: 3, kind: input, shape index: {}]   ;;  %s4069_s4 = inlined_call_operand.vmem [shape: f32[2,1,32], index: 4, kind: input, shape index: {}]   ;;  %s4070_s5 = inlined_call_operand.vmem [shape: bf16[2,32,96], index: 5, kind: input, shape index: {}]   ;;  %s4071_s6 = inlined_call_operand.vmem [shape: f32[2,1,96], index: 6, kind: input, shape index: {}]   ;;  %s4072_s7 = inlined_call_operand.vmem [shape: bf16[2,32,32], index: 7, kind: input, shape index: {}]   ;;  %s4073_s8 = inlined_call_operand.vmem [shape: f32[2,1,32], index: 8, kind: input, shape index: {}]   ;;  %s4074_s9 = inlined_call_operand.vmem [shape: f32[2,1,32], index: 9, kind: input, shape index: {}]   ;;  %s4075_s10 = inlined_call_operand.vmem [shape: f32[2,1,32], index: 10, kind: input, shape index: {}]   ;;  %s4076_s11 = inlined_call_operand.vmem [shape: bf16[2,32,64], index: 11, kind: input, shape index: {}]   ;;  %s4077_s12 = inlined_call_operand.vmem [shape: f32[2,1,64], index: 12, kind: input, shape index: {}]   ;;  %s4078_s13 = inlined_call_operand.vmem [shape: bf16[2,64,32], index: 13, kind: input, shape index: {}]   ;;  %s4079_s14 = inlined_call_operand.vmem [shape: f32[2,1,32], index: 14, kind: input, shape index: {}]   ;;  %s4080_s15 = inlined_call_operand.vmem [shape: f32[1,32], index: 15, kind: input, shape index: {}]   ;;  %s4081_s16 = inlined_call_operand.vmem [shape: f32[1,32], index: 16, kind: input, shape index: {}]   ;;  %s4082_s17 = inlined_call_operand.vmem [shape: bf16[1,32], index: 17, kind: input, shape index: {}]   ;;  %s4083_s18 = inlined_call_operand.<no memory space> [shape: f32[1,1], index: 18, kind: input, shape index: {}]   ;;  %s4084_s19 = inlined_call_operand.vmem [shape: bf16[32,128], index: 19, kind: input, shape index: {}]   ;;  %s4085_s20 = inlined_call_operand.vmem [shape: f32[1,128], index: 20, kind: input, shape index: {}]   ;;  %s4086_s21 = inlined_call_operand.hbm [shape: f32[2,1,128], index: 21, kind: output, shape index: {0}]   ;;  %s4087_s22 = inlined_call_operand.hbm [shape: f32[2,1,32], index: 22, kind: output, shape index: {1}]  }
   0x1   :  { %4110 = sst [smem:[#allocation15_spill]] %s4065_s0  ;;  %v28_v0 = vstv %s4083_s18 }
   0x2   :  { %4111 = sst [smem:[#allocation16_spill]] %s4066_s1  ;;  %29 = vst [vmem:[#allocation2] sm:$0x1] %v28_v0 }
   0x3   :  { %4112 = sst [smem:[#allocation17_spill]] %s4067_s2 }
   0x4   :  { %4113 = sst [smem:[#allocation18_spill]] %s4068_s3 }
   0x5   :  { %4114 = sst [smem:[#allocation19_spill]] %s4069_s4 }
   0x6   :  { %4115 = sst [smem:[#allocation20_spill]] %s4070_s5 }
   0x7   :  { %4116 = sst [smem:[#allocation21_spill]] %s4071_s6 }
   0x8   :  { %4117 = sst [smem:[#allocation22_spill]] %s4072_s7 }
   0x9   :  { %30 = vsyncpa [#allocation4], 0 }
   0xa   :  { %32 = vsyncpa [#allocation4 + $0x1], 0 }
   0xb   :  { %33 = vsyncpa [#allocation6], 0 }
   0xc   :  { %35 = vsyncpa [#allocation6 + $0x1], 0  ;;  %s3540_s29 = smov 0   ;;  %s3542_s30 = smov 0  }
   0xd   :  { %s3544_s4 = smov 0   ;;  %s3546_s0 = smov 0  }
   0xe LB: > { %4118 = sst [smem:[#allocation9_spill]] %s3397_s29  ;;  %s3561_s18 = sadd.s32 4294967295, %s3409_s0   ;;  %s3409_s0 = sphi %s3546_s0, %s4144_s0   ;;  %s3405_s4 = sphi %s3544_s4, %s4146_s4   ;;  %s3401_s30 = sphi %s3542_s30, %s4148_s30   ;;  %s3397_s29 = sphi %s3540_s29, %s4147_s29  }
   0xf   : > { %4119 = sst [smem:[#allocation10_spill]] %s3405_s4  ;;  %s2788_s23 = sadd.s32 4294967294, %s3409_s0  }
  0x10   : > { %4120 = sst [smem:[#allocation11_spill]] %s3409_s0  ;;  %s3565_s1 = sadd.s32 1, %s3409_s0  }
  0x11   : > { %4121 = sst [smem:[#allocation12_spill]] %s3565_s1  ;;  %s494_s5 = sadd.s32 1, %s3405_s4 }
  0x12   : > { %s491_s24 = ssub.s32 %s3409_s0, %s3565_s1  ;;  %p504_p0 = scmp.ne.s32.totalorder %s3405_s4, %s3401_s30 }
  0x13   : > { %p492_p1 = scmp.eq.s32.totalorder %s491_s24, 0  ;;  %p505_p2 = scmp.eq.s32.totalorder %s3561_s18, 1 }
  0x14   : > { %p510_p3 = scmp.ne.s32.totalorder %s3401_s30, %s3397_s29  ;;  %p511_p4 = scmp.eq.s32.totalorder %s2788_s23, 1 }
  0x15   : > { %s3576_s6 = scalar_select %p492_p1, %s3405_s4, %s494_s5  }
  0x16   : > { %p3578_p5 = por %p505_p2, %p504_p0  ;;  %p3582_p6 = por %p511_p4, %p510_p3 }
  0x17   : > { %4122 = sst [smem:[#allocation13_spill]] %s3576_s6  ;;  %p2791_p7 = scmp.ge.s32.totalorder %s3409_s0, 1 }
  0x18   : > { %s4124_s26 = scalar_select %p3582_p6, 1, 0 }
  0x19   : > { %p623_p8 = scmp.lt.s32.totalorder %s3409_s0, 3 }
  0x1a   : > { %4125 = sst [smem:[#allocation14_spill]] %s4124_s26 }
  0x1b   : > { %p624_p9 = pnand %p2791_p7, %p623_p8 }
  0x1c   : > { %s4126_s3 = sld [smem:[#allocation16_spill]] (!%p624_p9)  ;;  %v3411_v2 = vmov (!%p624_p9), 0   ;;  %p688_p10 = scmp.lt.s32.totalorder (!%p624_p9), %s3561_s18, 1  ;;  %vm869_vm0 = vcmask (!%p624_p9), 154624   ;;  %vm897_vm1 = vcmask (!%p624_p9), 1040384   ;;  %vm898_vm2 = vcmask (!%p624_p9), 1041408  }
  0x1d   : > { %627 = sbr.rel (%p624_p9) target bundleno = 7759 (0x1e4f), region = 104  ;;  %904 = vmatprep.subr.bf16.mxu0 (!%p624_p9), %v3411_v2  ;;  %3190 = vset.pattern.permute.xlu1 (!%p624_p9), %v3411_v2  ;;  %s4127_s23 = sld [smem:[#allocation15_spill]] (!%p624_p9)  ;;  %v3412_v9 = vmov (!%p624_p9), 65535   ;;  %vm1049_vm3 = vcmask (!%p624_p9), 261120   ;;  %vm3414_vm4 = vmmov (!%p624_p9), 0   ;;  %vm1178_vm5 = vcmask (!%p624_p9), 130048  }
  0x1e   : > { %3191 = vset.pattern.permute.xlu0 (!%p624_p9), %v3411_v2  ;;  %v899_v10 = vsel (!%p624_p9), %vm897_vm1, 4294967295, %v3412_v9  ;;  %s4128_s6 = sld [smem:[#allocation17_spill]] (!%p624_p9)  ;;  %s4129_s1 = sld [smem:[#allocation20_spill]] (!%p624_p9)  ;;  %vm1690_vm6 = vcmask (!%p624_p9), 523264   ;;  %vm2555_vm7 = vcmask (!%p624_p9), 122880   ;;  %vm2673_vm8 = vcmask (!%p624_p9), 253952  }
  0x1f   : > { %v900_v13 = vsel (!%p624_p9), %vm898_vm2, %v899_v10, 0  ;;  %s4131_s29 = sld [smem:[#allocation19_spill]] (!%p624_p9)  ;;  %s4104_s27 = smov (!%p624_p9), 96  }
  0x20   : > { %s4103_s28 = smov (!%p624_p9), 80   ;;  %s4102_s5 = smov (!%p624_p9), 64  }
  0x21   : > { %s4134_s7 = sld [smem:[#allocation22_spill]] (!%p624_p9)  ;;  %s4100_s0 = smov (!%p624_p9), 48  }
  0x22   : > { %v3192_v1 = vld [vmem:[%s4126_s3] sm:$0xff] (!%p624_p9)   ;;  %v3193_v3 = vld [vmem:[%s4126_s3 + $0x8] sm:$0xff] (!%p624_p9)   ;;  %v3194_v4 = vld [vmem:[%s4126_s3 + $0x10] sm:$0xff] (!%p624_p9)  }
  0x23   : > { %905 = vmatpush1.bf16.msra.mxu0 (!%p624_p9), %v3192_v1  ;;  %v3195_v5 = vld [vmem:[%s4126_s3 + $0x18] sm:$0xff] (!%p624_p9)   ;;  %v3196_v6 = vld [vmem:[%s4126_s3 + $0x20] sm:$0xff] (!%p624_p9)   ;;  %v3197_v8 = vld [vmem:[%s4126_s3 + $0x28] sm:$0xff] (!%p624_p9)  }
  0x24   : > { %906 = vmatprep.subr.bf16.mxu0 %v3411_v2  ;;  %s689_s2 = scalar_select %p688_p10, %s3561_s18, 1  ;;  %v3198_v11 = vld [vmem:[%s4126_s3 + $0x30] sm:$0xff]   ;;  %v3199_v12 = vld [vmem:[%s4126_s3 + $0x38] sm:$0xff]   ;;  %v3200_v14 = vld [vmem:[%s4126_s3 + $0x40] sm:$0xff]  }
  0x25   : > { %v3201_v15 = vld [vmem:[%s4126_s3 + $0x48] ss:$0 sps:$4 sm:$0x33]   ;;  %s4132_s24 = smov %s4131_s29 }
  0x26   : > { %s3136_s4 = smul.u32 144, %s689_s2  ;;  %v902_v16 = vand.u32 %v3201_v15, %v900_v13  ;;  %s4133_s2 = sld [smem:[#allocation21_spill]] }
  0x27   : > { %907 = vmatpush1.bf16.msra.mxu0 %v3193_v3 }
  0x28   : > { %908 = vmatprep.subr.bf16.mxu0 %v3411_v2  ;;  %s3605_s26 = scalar_lea.vmem %s4127_s23, %s3136_s4  ;;  %s4101_s23 = smov 112  }
  0x29   : > { %v3204_v7 = vld [vmem:[%s3605_s26 + $0x4] ss:$8 sps:$4 sm:$0xff]   ;;  %v3202_v17 = vld [vmem:[%s3605_s26] ss:$8 sps:$4 sm:$0xff]   ;;  %v3205_v18 = vld [vmem:[%s3605_s26 + $0x14] ss:$8 sps:$4 sm:$0xff]  }
  0x2a   : > { %2821 = vmatprep.mubr.msk.bf16.mxu0 %vm869_vm0, %v3204_v7  ;;  %v3207_v19 = vld [vmem:[%s3605_s26 + $0x10] ss:$8 sps:$4 sm:$0xff]   ;;  %v3208_v20 = vld [vmem:[%s3605_s26 + $0x24] ss:$8 sps:$4 sm:$0xff]   ;;  %v3210_v21 = vld [vmem:[%s3605_s26 + $0x20] ss:$8 sps:$4 sm:$0xff]  }
  0x2b   : > { %909 = vmatpush1.bf16.msra.mxu0 %v3194_v4  ;;  %v3211_v22 = vld [vmem:[%s3605_s26 + $0x34] ss:$8 sps:$4 sm:$0xff]   ;;  %v3213_v23 = vld [vmem:[%s3605_s26 + $0x30] ss:$8 sps:$4 sm:$0xff]   ;;  %v3214_v24 = vld [vmem:[%s3605_s26 + $0x44] ss:$8 sps:$4 sm:$0xff]  }
  0x2c   : > { %910 = vmatprep.subr.bf16.mxu0 %v3411_v2  ;;  %v3216_v25 = vld [vmem:[%s3605_s26 + $0x40] ss:$8 sps:$4 sm:$0xff]   ;;  %v3217_v26 = vld [vmem:[%s3605_s26 + $0x54] ss:$8 sps:$4 sm:$0xff]   ;;  %v3219_v27 = vld [vmem:[%s3605_s26 + $0x50] ss:$8 sps:$4 sm:$0xff]  }
  0x2d   : > { %v3220_v28 = vld [vmem:[%s3605_s26 + $0x64] ss:$8 sps:$4 sm:$0xff]   ;;  %v3222_v29 = vld [vmem:[%s3605_s26 + $0x60] ss:$8 sps:$4 sm:$0xff]   ;;  %v3223_v30 = vld [vmem:[%s3605_s26 + $0x74] ss:$8 sps:$4 sm:$0xff]  }
  0x2e   : > { %v3225_v31 = vld [vmem:[%s3605_s26 + $0x70] ss:$8 sps:$4 sm:$0xff]   ;;  %v3226_v32 = vld [vmem:[%s3605_s26 + $0x84] ss:$8 sps:$4 sm:$0xff]   ;;  %v3228_v33 = vld [vmem:[%s3605_s26 + $0x80] ss:$8 sps:$4 sm:$0xff]  }
  0x2f   : > { %911 = vmatpush1.bf16.msra.mxu0 %v3195_v5  ;;  %s4130_s26 = sld [smem:[#allocation18_spill]] }
  0x30   : > { %912 = vmatprep.subr.bf16.mxu0 %v3411_v2 }
  0x33   : > { %913 = vmatpush1.bf16.msra.mxu0 %v3196_v6 }
  0x34   : > { %914 = vmatprep.subr.bf16.mxu0 %v3411_v2 }
  0x37   : > { %915 = vmatpush1.bf16.msra.mxu0 %v3197_v8 }
  0x38   : > { %916 = vmatprep.subr.bf16.mxu0 %v3411_v2 }
  0x3b   : > { %917 = vmatpush1.bf16.msra.mxu0 %v3198_v11 }
  0x3c   : > { %918 = vmatprep.subr.bf16.mxu0 %v3411_v2 }
  0x3f   : > { %919 = vmatpush1.bf16.msra.mxu0 %v3199_v12 }
  0x40   : > { %920 = vmatprep.subr.bf16.mxu0 %v3411_v2 }
  0x43   : > { %921 = vmatpush1.bf16.msra.mxu0 %v3200_v14 }
  0x44   : > { %922 = vmatprep.subr.bf16.mxu0 %v3411_v2 }
  0x47   : > { %923 = vmatpush1.bf16.msra.mxu0 %v902_v16 }
  0x4a   : > { %937 = vmatmul.mubr.bf16.vlgmr.msra.gmra.mrb[0].mxu0 %v3202_v17 }
  0x4b   : > { %2822 = vmatprep.mubr.msk.bf16.mxu0 %vm869_vm0, %v3205_v18 }
  0x52   : > { %945 = vmatmul.mubr.bf16.gmra.mrb[4].mxu0 %v3207_v19 }
  0x53   : > { %2823 = vmatprep.mubr.msk.bf16.mxu0 %vm869_vm0, %v3208_v20 }
  0x5a   : > { %953 = vmatmul.mubr.bf16.gmra.mrb[8].mxu0 %v3210_v21 }
  0x5b   : > { %2824 = vmatprep.mubr.msk.bf16.mxu0 %vm869_vm0, %v3211_v22 }
  0x62   : > { %961 = vmatmul.mubr.bf16.gmra.mrb[12].mxu0 %v3213_v23 }
  0x63   : > { %2825 = vmatprep.mubr.msk.bf16.mxu0 %vm869_vm0, %v3214_v24 }
  0x6a   : > { %969 = vmatmul.mubr.bf16.gmra.mrb[16].mxu0 %v3216_v25 }
  0x6b   : > { %2826 = vmatprep.mubr.msk.bf16.mxu0 %vm869_vm0, %v3217_v26 }
  0x72   : > { %977 = vmatmul.mubr.bf16.gmra.mrb[20].mxu0 %v3219_v27 }
  0x73   : > { %2827 = vmatprep.mubr.msk.bf16.mxu0 %vm869_vm0, %v3220_v28 }
  0x7a   : > { %985 = vmatmul.mubr.bf16.gmra.mrb[24].mxu0 %v3222_v29 }
  0x7b   : > { %2828 = vmatprep.mubr.msk.bf16.mxu0 %vm869_vm0, %v3223_v30 }
  0x82   : > { %993 = vmatmul.mubr.bf16.gmra.mrb[28].mxu0 %v3225_v31 }
  0x83   : > { %2829 = vmatprep.mubr.msk.bf16.mxu0 %vm869_vm0, %v3226_v32 }
  0x8a   : > { %1001 = vmatmul.mubr.bf16.gmra.mrb[32].mxu0 %v3228_v33 }
 0x11d   : > { %v938_v34 = vpop.f32.mrb[0].mxu0 }
 0x11e   : > { %v940_v35 = vpop.f32.mrb[1].mxu0  ;;  %v1009_v39 = vmax.f32 %v938_v34, 0.0 }
 0x11f   : > { %v941_v36 = vpop.f32.mrb[2].mxu0 }
 0x120   : > { %v943_v37 = vpop.f32.mrb[3].mxu0  ;;  %v1010_v43 = vmax.f32 %v941_v36, 0.0  ;;  %v1043_v36 = vld [vmem:[%s4128_s6] sm:$0xff] }
 0x125   : > { %v946_v38 = vpop.f32.mrb[4].mxu0 }
 0x126   : > { %v1011_v40 = vmax.f32 %v946_v38, 0.0  ;;  %v948_v41 = vpop.f32.mrb[5].mxu0 }
 0x127   : > { %v949_v42 = vpop.f32.mrb[6].mxu0 }
 0x128   : > { %v1027_v44 = vmax.f32 %v1009_v39, %v1011_v40  ;;  %v1012_v45 = vmax.f32 %v949_v42, 0.0  ;;  %v951_v46 = vpop.f32.mrb[7].mxu0  ;;  %v1044_v40 = vld [vmem:[%s4128_s6 + $0x8] sm:$0xff] }
 0x12a   : > { %v1028_v47 = vmax.f32 %v1010_v43, %v1012_v45 }
 0x12d   : > { %v954_v48 = vpop.f32.mrb[8].mxu0 }
 0x12e   : > { %v1013_v49 = vmax.f32 %v954_v48, 0.0  ;;  %v956_v50 = vpop.f32.mrb[9].mxu0 }
 0x12f   : > { %v957_v51 = vpop.f32.mrb[10].mxu0 }
 0x130   : > { %v1029_v52 = vmax.f32 %v1027_v44, %v1013_v49  ;;  %v1014_v53 = vmax.f32 %v957_v51, 0.0  ;;  %v959_v54 = vpop.f32.mrb[11].mxu0 }
 0x132   : > { %v1030_v55 = vmax.f32 %v1028_v47, %v1014_v53 }
 0x135   : > { %v962_v56 = vpop.f32.mrb[12].mxu0 }
 0x136   : > { %v1015_v57 = vmax.f32 %v962_v56, 0.0  ;;  %v964_v58 = vpop.f32.mrb[13].mxu0  ;;  %v3229_v56 = vld [vmem:[%s4129_s1] sm:$0xff]  }
 0x137   : > { %v965_v59 = vpop.f32.mrb[14].mxu0  ;;  %v3230_v58 = vld [vmem:[%s4129_s1 + $0x8] sm:$0xff]  }
 0x138   : > { %v1031_v60 = vmax.f32 %v1029_v52, %v1015_v57  ;;  %v1016_v61 = vmax.f32 %v965_v59, 0.0  ;;  %v967_v62 = vpop.f32.mrb[15].mxu0  ;;  %v3413_v57 = vmov 0.0  }
 0x139   : > { %2976 = vmatprep.subr.bf16.mxu1 %v3413_v57  ;;  %3060 = vmatprep.subr.bf16.mxu0 %v3413_v57 }
 0x13a   : > { %v1032_v63 = vmax.f32 %v1030_v55, %v1016_v61  ;;  %2977 = vmatpush3.bf16.msra.mxu1 %v3229_v56  ;;  %2980 = vmatprep.mubr.msk.bf16.mxu1 %vm3414_vm4, %v3413_v57 }
 0x13b   : > { %2978 = vmatprep.subr.bf16.mxu1 %v3413_v57  ;;  %3062 = vmatprep.mubr.msk.bf16.mxu0 %vm3414_vm4, %v3413_v57 }
 0x13d   : > { %v970_v0 = vpop.f32.mrb[16].mxu0 }
 0x13e   : > { %v1017_v1 = vmax.f32 %v970_v0, 0.0  ;;  %v972_v2 = vpop.f32.mrb[17].mxu0  ;;  %2979 = vmatpush3.bf16.msra.mxu1 %v3230_v58 }
 0x13f   : > { %v973_v3 = vpop.f32.mrb[18].mxu0  ;;  %2984 = vmatprep.subr.bf16.mxu1 %v3413_v57 }
 0x140   : > { %v1033_v4 = vmax.f32 %v1031_v60, %v1017_v1  ;;  %v1018_v5 = vmax.f32 %v973_v3, 0.0  ;;  %v975_v6 = vpop.f32.mrb[19].mxu0  ;;  %v2830_v3 = vld [vmem:[%s4130_s26] ss:$0 sm:$0xff] }
 0x142   : > { %v1034_v7 = vmax.f32 %v1032_v63, %v1018_v5 }
 0x145   : > { %v978_v8 = vpop.f32.mrb[20].mxu0 }
 0x146   : > { %v1019_v9 = vmax.f32 %v978_v8, 0.0  ;;  %v980_v10 = vpop.f32.mrb[21].mxu0 }
 0x147   : > { %v981_v11 = vpop.f32.mrb[22].mxu0 }
 0x148   : > { %v1035_v12 = vmax.f32 %v1033_v4, %v1019_v9  ;;  %v1020_v13 = vmax.f32 %v981_v11, 0.0  ;;  %v983_v14 = vpop.f32.mrb[23].mxu0 }
 0x14a   : > { %v1036_v15 = vmax.f32 %v1034_v7, %v1020_v13  ;;  %v2831_v7 = vld [vmem:[%s4131_s29] ss:$0 sm:$0xff]  ;;  %s4139_s29 = smov 48  }
 0x14d   : > { %v986_v16 = vpop.f32.mrb[24].mxu0 }
 0x14e   : > { %v1021_v17 = vmax.f32 %v986_v16, 0.0  ;;  %v988_v18 = vpop.f32.mrb[25].mxu0 }
 0x14f   : > { %v989_v19 = vpop.f32.mrb[26].mxu0 }
 0x150   : > { %v1037_v20 = vmax.f32 %v1035_v12, %v1021_v17  ;;  %v1022_v21 = vmax.f32 %v989_v19, 0.0  ;;  %v991_v22 = vpop.f32.mrb[27].mxu0  ;;  %v2832_v12 = vld [vmem:[%s4133_s2] ss:$0 sm:$0xff] }
 0x152   : > { %v1038_v23 = vmax.f32 %v1036_v15, %v1022_v21 }
 0x155   : > { %v994_v24 = vpop.f32.mrb[28].mxu0 }
 0x156   : > { %v1023_v25 = vmax.f32 %v994_v24, 0.0  ;;  %v996_v26 = vpop.f32.mrb[29].mxu0 }
 0x157   : > { %v997_v27 = vpop.f32.mrb[30].mxu0 }
 0x158   : > { %v1039_v28 = vmax.f32 %v1037_v20, %v1023_v25  ;;  %v1024_v29 = vmax.f32 %v997_v27, 0.0  ;;  %v999_v30 = vpop.f32.mrb[31].mxu0 }
 0x15a   : > { %v1040_v31 = vmax.f32 %v1038_v23, %v1024_v29 }
 0x15d   : > { %v1002_v32 = vpop.f32.mrb[32].mxu0 }
 0x15e   : > { %v1025_v33 = vmax.f32 %v1002_v32, 0.0  ;;  %v1004_v34 = vpop.f32.mrb[33].mxu0 }
 0x15f   : > { %v1005_v35 = vpop.f32.mrb[34].mxu0 }
 0x160   : > { %v1041_v37 = vmax.f32 %v1039_v28, %v1025_v33  ;;  %v1026_v38 = vmax.f32 %v1005_v35, 0.0  ;;  %v1007_v39 = vpop.f32.mrb[35].mxu0 }
 0x162   : > { %v1042_v41 = vmax.f32 %v1040_v31, %v1026_v38  ;;  %v3658_v42 = vadd.f32 %v1043_v36, %v1041_v37 }
 0x164   : > { %v3660_v43 = vadd.f32 %v1044_v40, %v1042_v41  ;;  %v1050_v44 = vsel %vm1049_vm3, %v3658_v42, 0.0 }
 0x165   : > { %1051 = vadd.xlane.f32.xlu0 %v1050_v44 }
 0x166   : > { %v1053_v45 = vsel %vm1049_vm3, %v3660_v43, 0.0 }
 0x169   : > { %1054 = vadd.xlane.f32.xlu0 %v1053_v45 }
 0x1f2   : > { %v1052_v46 = vpop.xlane.xlu0 %1051 }
 0x1f3   : > { %v1057_v47 = vmul.f32 0.03125, %v1052_v46 }
 0x1f5   : > { %v1059_v48 = vsub.f32 %v3658_v42, %v1057_v47 }
 0x1f6   : > { %v1055_v49 = vpop.xlane.xlu0 %1054 }
 0x1f7   : > { %v1058_v50 = vmul.f32 0.03125, %v1055_v49  ;;  %v1061_v51 = vmul.f32 %v1059_v48, %v1059_v48  ;;  %v3231_v49 = vld [vmem:[%s4134_s7] sm:$0xff]  }
 0x1f9   : > { %v1060_v52 = vsub.f32 %v3660_v43, %v1058_v50  ;;  %v1063_v53 = vsel %vm1049_vm3, %v1061_v51, 0.0 }
 0x1fa   : > { %1064 = vadd.xlane.f32.xlu1 %v1063_v53 }
 0x1fb   : > { %v1062_v54 = vmul.f32 %v1060_v52, %v1060_v52 }
 0x1fd   : > { %v1066_v55 = vsel %vm1049_vm3, %v1062_v54, 0.0 }
 0x1fe   : > { %1067 = vadd.xlane.f32.xlu1 %v1066_v55 }
 0x287   : > { %v1065_v59 = vpop.xlane.xlu1 %1064 }
 0x288   : > { %v1069_v60 = vmul.f32 0.03125, %v1065_v59 }
 0x28a   : > { %v1071_v61 = vadd.f32 1e-05, %v1069_v60 }
 0x28b   : > { %v1068_v62 = vpop.xlane.xlu1 %1067 }
 0x28c   : > { %3251 = vrsqrt.f32 %v1071_v61  ;;  %v1070_v63 = vmul.f32 0.03125, %v1068_v62 }
 0x28e   : > { %v1072_v0 = vadd.f32 1e-05, %v1070_v63 }
 0x290   : > { %3253 = vrsqrt.f32 %v1072_v0 }
 0x296   : > { %v3252_v1 = vpop.eup %3251 }
 0x297   : > { %v1075_v2 = vmul.f32 %v3252_v1, %v1059_v48 }
 0x299   : > { %v1083_v6 = vmul.f32 %v2830_v3, %v1075_v2 }
 0x29a   : > { %v3254_v4 = vpop.eup %3253 }
 0x29b   : > { %v1076_v5 = vmul.f32 %v3254_v4, %v1060_v52  ;;  %v1091_v9 = vadd.f32 %v2831_v7, %v1083_v6 }
 0x29d   : > { %v1084_v8 = vmul.f32 %v2830_v3, %v1076_v5 }
 0x29f   : > { %v1092_v10 = vadd.f32 %v2831_v7, %v1084_v8 }
 0x2a1   : > { %v1093_v11 = vpack.c.bf16 %v1092_v10, %v1091_v9 }
 0x2a3   : > { %2981 = vmatmul.mubr.msk.bf16.vlgmr.msra.gmra.mrb[0].mxu1 %vm1049_vm3, %v1093_v11 }
 0x2a4   : > { %2986 = vmatprep.mubr.msk.bf16.mxu1 %vm3414_vm4, %v3413_v57 }
 0x376   : > { %v1154_v13 = vpop.f32.mrb[0].mxu1 }
 0x377   : > { %v2982_v14 = vpop.f32.mrb[1].mxu1  ;;  %v1155_v16 = vadd.f32 %v2832_v12, %v1154_v13 }
 0x378   : > { %v1157_v15 = vpop.f32.mrb[2].mxu1 }
 0x379   : > { %v1158_v17 = vadd.f32 %v2832_v12, %v1157_v15  ;;  %v2983_v18 = vpop.f32.mrb[3].mxu1 }
 0x37b   : > { %v3696_v19 = vpack.c.bf16 %v1158_v17, %v1155_v16 }
 0x37d   : > { %1176 = vrot.lane.b32.xlu0 %v3696_v19, %s4104_s27 }
 0x381   : > { %1353 = vrot.lane.b32.xlu0 %v3696_v19, %s4103_s28  ;;  %s4137_s28 = smov 64  }
 0x385   : > { %1351 = vrot.lane.b32.xlu0 %v3696_v19, %s4101_s23  ;;  %s4135_s23 = smov 96  }
 0x3ef   : > { %v1177_v20 = vpop.permute.xlu0 %1176 }
 0x3f0   : > { %v1183_v21 = vsel %vm1178_vm5, %v1177_v20, 0 }
 0x3f1   : > { %2985 = vmatpush3.bf16.xpose.msra.mxu1 %v1183_v21 }
 0x3f2   : > { %2990 = vmatprep.subr.bf16.mxu1 %v3413_v57 }
 0x3f3   : > { %v1354_v53 = vpop.permute.xlu0 %1353 }
 0x3f4   : > { %v1359_v58 = vsel %vm1178_vm5, %v1354_v53, 0 }
 0x3f7   : > { %v1352_v59 = vpop.permute.xlu0 %1351 }
 0x3f8   : > { %2987 = vmatmul.mubr.msk.bf16.vlgmr.msra.gmra.mrb[4].mxu1 %vm1178_vm5, %v3696_v19 }
 0x3f9   : > { %2992 = vmatprep.mubr.msk.bf16.mxu1 %vm3414_vm4, %v3413_v57 }
 0x4cb   : > { %v1219_v22 = vpop.f32.mrb[4].mxu1 }
 0x4cc   : > { %v1226_v23 = vmul.f32 0.25, %v1219_v22  ;;  %v2988_v24 = vpop.f32.mrb[5].mxu1  ;;  %v3232_v22 = vld [vmem:[%s4134_s7 + $0x8] sm:$0xff]  }
 0x4cd   : > { %v1222_v25 = vpop.f32.mrb[6].mxu1 }
 0x4ce   : > { %v1227_v26 = vmul.f32 0.25, %v1222_v25  ;;  %v2989_v27 = vpop.f32.mrb[7].mxu1  ;;  %v1228_v28 = vsel %vm1178_vm5, %v1226_v23, -inf }
 0x4cf   : > { %1229 = vmax.xlane.f32.xlu1 %v1228_v28  ;;  %v2836_v28 = vld [vmem:[%s4073_s8] ss:$0 sm:$0xff] }
 0x4d0   : > { %v1231_v29 = vsel %vm1178_vm5, %v1227_v26, -inf }
 0x4d3   : > { %1232 = vmax.xlane.f32.xlu1 %v1231_v29  ;;  %v1173_v29 = vadd.f32 %v2836_v28, %v3658_v42 }
 0x55c   : > { %v1230_v30 = vpop.xlane.xlu1 %1229 }
 0x55d   : > { %v1234_v31 = vsub.f32 %v1226_v23, %v1230_v30 }
 0x55f   : > { %v1236_v32 = vmul.f32 1.442695, %v1234_v31 }
 0x560   : > { %v1233_v33 = vpop.xlane.xlu1 %1232 }
 0x561   : > { %3255 = vpow2.f32 %v1236_v32  ;;  %v1235_v34 = vsub.f32 %v1227_v26, %v1233_v33  ;;  %v1174_v33 = vadd.f32 %v2836_v28, %v3660_v43 }
 0x563   : > { %v1238_v35 = vmul.f32 1.442695, %v1235_v34 }
 0x565   : > { %3257 = vpow2.f32 %v1238_v35 }
 0x56b   : > { %v3256_v36 = vpop.eup %3255 }
 0x56c   : > { %v1240_v37 = vsel %vm1178_vm5, %v3256_v36, 0.0 }
 0x56d   : > { %1241 = vadd.xlane.f32.xlu1 %v1240_v37 }
 0x56f   : > { %v3258_v38 = vpop.eup %3257 }
 0x570   : > { %v1243_v39 = vsel %vm1178_vm5, %v3258_v38, 0.0 }
 0x571   : > { %1244 = vadd.xlane.f32.xlu1 %v1243_v39 }
 0x582   : > { %1251 = vrot.lane.b32.xlu1 %v3696_v19, %s4102_s5  ;;  %s4138_s5 = smov 112  }
 0x5fa   : > { %v1242_v40 = vpop.xlane.xlu1 %1241 }
 0x5fb   : > { %3259 = vrcp.f32 %v1242_v40 }
 0x5fe   : > { %v1245_v41 = vpop.xlane.xlu1 %1244 }
 0x5ff   : > { %3261 = vrcp.f32 %v1245_v41 }
 0x602   : > { %v1252_v44 = vpop.permute.xlu1 %1251 }
 0x603   : > { %2991 = vmatpush3.bf16.msra.mxu1 %v1252_v44 }
 0x604   : > { %2996 = vmatprep.subr.bf16.mxu1 %v3413_v57 }
 0x605   : > { %v3260_v45 = vpop.eup %3259 }
 0x606   : > { %v1248_v47 = vmul.f32 %v3260_v45, %v3256_v36 }
 0x609   : > { %v3262_v46 = vpop.eup %3261 }
 0x60a   : > { %v1249_v48 = vmul.f32 %v3262_v46, %v3258_v38 }
 0x60c   : > { %v1250_v50 = vpack.c.bf16 %v1249_v48, %v1248_v47 }
 0x60e   : > { %2993 = vmatmul.mubr.msk.bf16.vlgmr.msra.gmra.mrb[8].mxu1 %vm1178_vm5, %v1250_v50  ;;  %v3234_v50 = vld [vmem:[%s4076_s11 + $0x8] sm:$0xff]  }
 0x60f   : > { %2997 = vmatpush3.bf16.msra.mxu1 %v3231_v49  ;;  %2998 = vmatprep.mubr.msk.bf16.mxu1 %vm3414_vm4, %v3413_v57  ;;  %v3233_v49 = vld [vmem:[%s4076_s11] sm:$0xff]  }
 0x610   : > { %3002 = vmatprep.subr.bf16.mxu1 %v3413_v57 }
 0x6e1   : > { %v1291_v51 = vpop.f32.mrb[8].mxu1 }
 0x6e2   : > { %v2994_v52 = vpop.f32.mrb[9].mxu1 }
 0x6e3   : > { %v1294_v54 = vpop.f32.mrb[10].mxu1 }
 0x6e4   : > { %v1298_v55 = vpack.c.bf16 %v1294_v54, %v1291_v51  ;;  %v2995_v56 = vpop.f32.mrb[11].mxu1 }
 0x6e6   : > { %2999 = vmatmul.mubr.msk.bf16.vlgmr.msra.gmra.mrb[12].mxu1 %vm1178_vm5, %v1298_v55 }
 0x6e7   : > { %3003 = vmatpush3.bf16.xpose.msra.mxu1 %v1359_v58  ;;  %3004 = vmatprep.mubr.msk.bf16.mxu1 %vm3414_vm4, %v3413_v57 }
 0x6e8   : > { %3008 = vmatprep.subr.bf16.mxu1 %v3413_v57 }
 0x6ee   : > { %3005 = vmatmul.mubr.msk.bf16.vlgmr.msra.gmra.mrb[16].mxu1 %vm1178_vm5, %v1352_v59 }
 0x6ef   : > { %3010 = vmatprep.mubr.msk.bf16.mxu1 %vm3414_vm4, %v3413_v57 }
 0x7c1   : > { %v1395_v60 = vpop.f32.mrb[16].mxu1 }
 0x7c2   : > { %v1402_v61 = vmul.f32 0.25, %v1395_v60  ;;  %v3006_v62 = vpop.f32.mrb[17].mxu1  ;;  %v2845_v60 = vld [vmem:[%s4074_s9] ss:$0 sm:$0xff] }
 0x7c3   : > { %v1398_v63 = vpop.f32.mrb[18].mxu1 }
 0x7c4   : > { %v1403_v0 = vmul.f32 0.25, %v1398_v63  ;;  %v3007_v1 = vpop.f32.mrb[19].mxu1  ;;  %v1404_v2 = vsel %vm1178_vm5, %v1402_v61, -inf }
 0x7c5   : > { %1405 = vmax.xlane.f32.xlu0 %v1404_v2 }
 0x7c6   : > { %v1407_v3 = vsel %vm1178_vm5, %v1403_v0, -inf }
 0x7c7   : > { %1408 = vmax.xlane.f32.xlu1 %v1407_v3 }
 0x852   : > { %v1406_v4 = vpop.xlane.xlu0 %1405 }
 0x853   : > { %v1410_v5 = vsub.f32 %v1402_v61, %v1406_v4 }
 0x854   : > { %v1409_v6 = vpop.xlane.xlu1 %1408 }
 0x855   : > { %v1412_v7 = vmul.f32 1.442695, %v1410_v5  ;;  %v1411_v8 = vsub.f32 %v1403_v0, %v1409_v6  ;;  %v2846_v0 = vld [vmem:[%s4075_s10] ss:$0 sm:$0xff]  ;;  %v3236_v6 = vld [vmem:[%s4078_s13 + $0x8] sm:$0xff]  }
 0x856   : > { %v3235_v5 = vld [vmem:[%s4078_s13] sm:$0xff]  }
 0x857   : > { %3263 = vpow2.f32 %v1412_v7  ;;  %v1414_v9 = vmul.f32 1.442695, %v1411_v8  ;;  %v3237_v7 = vld [vmem:[%s4078_s13 + $0x10] sm:$0xff]   ;;  %v3238_v8 = vld [vmem:[%s4078_s13 + $0x18] sm:$0xff]  }
 0x859   : > { %3265 = vpow2.f32 %v1414_v9  ;;  %v2847_v9 = vld [vmem:[%s4077_s12] ss:$0 sm:$0xff] }
 0x861   : > { %v3264_v10 = vpop.eup %3263 }
 0x862   : > { %v1416_v11 = vsel %vm1178_vm5, %v3264_v10, 0.0 }
 0x863   : > { %v3266_v12 = vpop.eup %3265  ;;  %1417 = vadd.xlane.f32.xlu0 %v1416_v11 }
 0x864   : > { %v1419_v13 = vsel %vm1178_vm5, %v3266_v12, 0.0 }
 0x867   : > { %1420 = vadd.xlane.f32.xlu0 %v1419_v13 }
 0x87d   : > { %1427 = vrot.lane.b32.xlu0 %v3696_v19, %s4100_s0  ;;  %s4136_s0 = smov 80  }
 0x8f0   : > { %v1418_v14 = vpop.xlane.xlu0 %1417 }
 0x8f1   : > { %3267 = vrcp.f32 %v1418_v14 }
 0x8f4   : > { %v1421_v15 = vpop.xlane.xlu0 %1420 }
 0x8f5   : > { %3269 = vrcp.f32 %v1421_v15 }
 0x8f8   : > { %v1428_v16 = vpop.permute.xlu0 %1427 }
 0x8f9   : > { %3009 = vmatpush3.bf16.msra.mxu1 %v1428_v16 }
 0x8fa   : > { %3014 = vmatprep.subr.bf16.mxu1 %v3413_v57 }
 0x8fb   : > { %v3268_v17 = vpop.eup %3267 }
 0x8fc   : > { %v1424_v20 = vmul.f32 %v3268_v17, %v3264_v10 }
 0x8ff   : > { %v3270_v18 = vpop.eup %3269 }
 0x900   : > { %v1425_v21 = vmul.f32 %v3270_v18, %v3266_v12 }
 0x902   : > { %v1426_v23 = vpack.c.bf16 %v1425_v21, %v1424_v20 }
 0x904   : > { %3011 = vmatmul.mubr.msk.bf16.vlgmr.msra.gmra.mrb[20].mxu1 %vm1178_vm5, %v1426_v23 }
 0x905   : > { %3015 = vmatpush3.bf16.msra.mxu1 %v3232_v22  ;;  %3016 = vmatprep.mubr.msk.bf16.mxu1 %vm3414_vm4, %v3413_v57 }
 0x906   : > { %3020 = vmatprep.subr.bf16.mxu1 %v3413_v57 }
 0x9d7   : > { %v1467_v19 = vpop.f32.mrb[20].mxu1 }
 0x9d8   : > { %v3012_v24 = vpop.f32.mrb[21].mxu1 }
 0x9d9   : > { %v1470_v25 = vpop.f32.mrb[22].mxu1 }
 0x9da   : > { %v1474_v26 = vpack.c.bf16 %v1470_v25, %v1467_v19  ;;  %v3013_v27 = vpop.f32.mrb[23].mxu1 }
 0x9dc   : > { %3017 = vmatmul.mubr.msk.bf16.vlgmr.msra.gmra.mrb[12].mxu1 %vm1178_vm5, %v1474_v26 }
 0x9dd   : > { %3024 = vmatprep.mubr.msk.bf16.mxu1 %vm3414_vm4, %v3413_v57  ;;  %3021 = vmatpush3.bf16.msra.mxu1 %v3233_v49 }
 0x9de   : > { %3022 = vmatprep.subr.bf16.mxu1 %v3413_v57 }
 0x9e1   : > { %3023 = vmatpush3.bf16.msra.mxu1 %v3234_v50 }
 0x9e2   : > { %3028 = vmatprep.subr.bf16.mxu1 %v3413_v57 }
 0xaaf   : > { %v1518_v30 = vpop.f32.mrb[12].mxu1 }
 0xab0   : > { %v3753_v31 = vadd.f32 %v1518_v30, %v1173_v29  ;;  %v3018_v32 = vpop.f32.mrb[13].mxu1 }
 0xab1   : > { %v1521_v34 = vpop.f32.mrb[14].mxu1 }
 0xab2   : > { %v3756_v35 = vadd.f32 %v1521_v34, %v1174_v33  ;;  %v3019_v36 = vpop.f32.mrb[15].mxu1  ;;  %v1529_v37 = vsel %vm1049_vm3, %v3753_v31, 0.0 }
 0xab3   : > { %1530 = vadd.xlane.f32.xlu1 %v1529_v37 }
 0xab4   : > { %v1532_v38 = vsel %vm1049_vm3, %v3756_v35, 0.0 }
 0xab7   : > { %1533 = vadd.xlane.f32.xlu1 %v1532_v38  ;;  %v2856_v38 = vld [vmem:[%s4079_s14] ss:$0 sm:$0xff] }
 0xb40   : > { %v1531_v39 = vpop.xlane.xlu1 %1530 }
 0xb41   : > { %v1535_v42 = vmul.f32 0.03125, %v1531_v39 }
 0xb43   : > { %v1537_v40 = vsub.f32 %v3753_v31, %v1535_v42 }
 0xb44   : > { %v1534_v41 = vpop.xlane.xlu1 %1533 }
 0xb45   : > { %v1536_v44 = vmul.f32 0.03125, %v1534_v41  ;;  %v1539_v45 = vmul.f32 %v1537_v40, %v1537_v40 }
 0xb47   : > { %v1538_v43 = vsub.f32 %v3756_v35, %v1536_v44  ;;  %v1541_v46 = vsel %vm1049_vm3, %v1539_v45, 0.0 }
 0xb48   : > { %1542 = vadd.xlane.f32.xlu1 %v1541_v46 }
 0xb49   : > { %v1540_v47 = vmul.f32 %v1538_v43, %v1538_v43 }
 0xb4b   : > { %v1544_v48 = vsel %vm1049_vm3, %v1540_v47, 0.0 }
 0xb4c   : > { %1545 = vadd.xlane.f32.xlu1 %v1544_v48 }
 0xbd5   : > { %v1543_v51 = vpop.xlane.xlu1 %1542 }
 0xbd6   : > { %v1547_v52 = vmul.f32 0.03125, %v1543_v51 }
 0xbd8   : > { %v1549_v53 = vadd.f32 1e-05, %v1547_v52 }
 0xbd9   : > { %v1546_v54 = vpop.xlane.xlu1 %1545 }
 0xbda   : > { %3271 = vrsqrt.f32 %v1549_v53  ;;  %v1548_v55 = vmul.f32 0.03125, %v1546_v54 }
 0xbdc   : > { %v1550_v56 = vadd.f32 1e-05, %v1548_v55 }
 0xbde   : > { %3273 = vrsqrt.f32 %v1550_v56  ;;  %v3239_v56 = vld [vmem:[%s4129_s1 + $0x10] sm:$0xff]  }
 0xbe4   : > { %v3272_v58 = vpop.eup %3271 }
 0xbe5   : > { %v1553_v59 = vmul.f32 %v3272_v58, %v1537_v40  ;;  %v3240_v58 = vld [vmem:[%s4129_s1 + $0x18] sm:$0xff]  }
 0xbe7   : > { %v1561_v62 = vmul.f32 %v2845_v60, %v1553_v59 }
 0xbe8   : > { %v3274_v61 = vpop.eup %3273 }
 0xbe9   : > { %v1554_v63 = vmul.f32 %v3274_v61, %v1538_v43  ;;  %v1569_v2 = vadd.f32 %v2846_v0, %v1561_v62 }
 0xbeb   : > { %v1562_v1 = vmul.f32 %v2845_v60, %v1554_v63 }
 0xbed   : > { %v1570_v3 = vadd.f32 %v2846_v0, %v1562_v1 }
 0xbef   : > { %v1571_v4 = vpack.c.bf16 %v1570_v3, %v1569_v2  ;;  %v2859_v3 = vld [vmem:[%s4130_s26 + $0x1] ss:$0 sm:$0xff] }
 0xbf1   : > { %3025 = vmatmul.mubr.msk.bf16.vlgmr.msra.gmra.mrb[24].mxu1 %vm1049_vm3, %v1571_v4 }
 0xbf2   : > { %3036 = vmatprep.mubr.msk.bf16.mxu1 %vm3414_vm4, %v3413_v57  ;;  %3029 = vmatpush3.bf16.msra.mxu1 %v3235_v5 }
 0xbf3   : > { %3030 = vmatprep.subr.bf16.mxu1 %v3413_v57 }
 0xbf6   : > { %3031 = vmatpush3.bf16.msra.mxu1 %v3236_v6 }
 0xbf7   : > { %3032 = vmatprep.subr.bf16.mxu1 %v3413_v57 }
 0xbfa   : > { %3033 = vmatpush3.bf16.msra.mxu1 %v3237_v7  ;;  %v2860_v7 = vld [vmem:[%s4132_s24 + $0x1] ss:$0 sm:$0xff] }
 0xbfb   : > { %3034 = vmatprep.subr.bf16.mxu1 %v3413_v57 }
 0xbfe   : > { %3035 = vmatpush3.bf16.msra.mxu1 %v3238_v8 }
 0xbff   : > { %3040 = vmatprep.subr.bf16.mxu1 %v3413_v57 }
 0xcc4   : > { %v1632_v10 = vpop.f32.mrb[24].mxu1 }
 0xcc5   : > { %v1633_v11 = vadd.f32 %v2847_v9, %v1632_v10  ;;  %v3026_v12 = vpop.f32.mrb[25].mxu1 }
 0xcc6   : > { %v1635_v13 = vpop.f32.mrb[26].mxu1  ;;  %v2866_v12 = vld [vmem:[%s4133_s2 + $0x1] ss:$0 sm:$0xff]  ;;  %s3420_s2 = smov [#allocation5]  }
 0xcc7   : > { %v1641_v14 = vmul.f32 0.044715, %v1633_v11  ;;  %v1636_v15 = vadd.f32 %v2847_v9, %v1635_v13  ;;  %v3027_v16 = vpop.f32.mrb[27].mxu1  ;;  %v1639_v29 = vmul.f32 0.5, %v1633_v11  ;;  %s3319_s6 = sshll.u32 %s3420_s2, 4  ;;  %s3320_s6 = int_to_ptr.vmem [resolvable:$false] %s3319_s6 }
 0xcc9   : > { %v1643_v17 = vmul.f32 %v1641_v14, %v1633_v11  ;;  %v1642_v18 = vmul.f32 0.044715, %v1636_v15  ;;  %v1640_v30 = vmul.f32 0.5, %v1636_v15 }
 0xccb   : > { %v1645_v20 = vmul.f32 %v1643_v17, %v1633_v11  ;;  %v1644_v21 = vmul.f32 %v1642_v18, %v1636_v15 }
 0xccd   : > { %v1647_v22 = vadd.f32 %v1645_v20, %v1633_v11  ;;  %v1646_v23 = vmul.f32 %v1644_v21, %v1636_v15 }
 0xccf   : > { %v1649_v19 = vmul.f32 0.7978846, %v1647_v22  ;;  %v1648_v24 = vadd.f32 %v1646_v23, %v1636_v15 }
 0xcd1   : > { %3275 = vtanh.f32 %v1649_v19  ;;  %v1650_v25 = vmul.f32 0.7978846, %v1648_v24 }
 0xcd3   : > { %3277 = vtanh.f32 %v1650_v25 }
 0xcdb   : > { %v3276_v26 = vpop.eup %3275 }
 0xcdc   : > { %v1653_v27 = vadd.f32 1.0, %v3276_v26 }
 0xcdd   : > { %v3278_v28 = vpop.eup %3277 }
 0xcde   : > { %v1654_v32 = vadd.f32 1.0, %v3278_v28  ;;  %v1655_v33 = vmul.f32 %v1653_v27, %v1639_v29 }
 0xce0   : > { %v1656_v34 = vmul.f32 %v1654_v32, %v1640_v30 }
 0xce2   : > { %v1657_v36 = vpack.c.bf16 %v1656_v34, %v1655_v33 }
 0xce4   : > { %3037 = vmatmul.mubr.msk.bf16.vlgmr.msra.gmra.mrb[28].mxu1 %vm1690_vm6, %v1657_v36 }
 0xce5   : > { %3044 = vmatprep.mubr.msk.bf16.mxu1 %vm3414_vm4, %v3413_v57  ;;  %3041 = vmatpush3.bf16.msra.mxu1 %v3239_v56 }
 0xce6   : > { %3042 = vmatprep.subr.bf16.mxu1 %v3413_v57 }
 0xce9   : > { %3043 = vmatpush3.bf16.msra.mxu1 %v3240_v58 }
 0xcea   : > { %3048 = vmatprep.subr.bf16.mxu1 %v3413_v57 }
 0xdb7   : > { %v1728_v37 = vpop.f32.mrb[28].mxu1 }
 0xdb8   : > { %v1735_v39 = vadd.f32 %v3753_v31, %v1728_v37  ;;  %v3038_v42 = vpop.f32.mrb[29].mxu1 }
 0xdb9   : > { %v1731_v40 = vpop.f32.mrb[30].mxu1 }
 0xdba   : > { %v3809_v41 = vadd.f32 %v2856_v38, %v1735_v39  ;;  %v1736_v44 = vadd.f32 %v3756_v35, %v1731_v40  ;;  %v3039_v45 = vpop.f32.mrb[31].mxu1 }
 0xdbc   : > { %v3812_v43 = vadd.f32 %v2856_v38, %v1736_v44  ;;  %v1750_v46 = vsel %vm1049_vm3, %v3809_v41, 0.0 }
 0xdbd   : > { %1751 = vadd.xlane.f32.xlu1 %v1750_v46 }
 0xdbe   : > { %v1753_v47 = vsel %vm1049_vm3, %v3812_v43, 0.0 }
 0xdc1   : > { %1754 = vadd.xlane.f32.xlu1 %v1753_v47 }
 0xe4a   : > { %v1752_v48 = vpop.xlane.xlu1 %1751 }
 0xe4b   : > { %v1756_v49 = vmul.f32 0.03125, %v1752_v48 }
 0xe4d   : > { %v1758_v31 = vsub.f32 %v3809_v41, %v1756_v49 }
 0xe4e   : > { %v1755_v50 = vpop.xlane.xlu1 %1754 }
 0xe4f   : > { %v1757_v51 = vmul.f32 0.03125, %v1755_v50  ;;  %v1760_v52 = vmul.f32 %v1758_v31, %v1758_v31 }
 0xe51   : > { %v1759_v35 = vsub.f32 %v3812_v43, %v1757_v51  ;;  %v1762_v53 = vsel %vm1049_vm3, %v1760_v52, 0.0 }
 0xe52   : > { %1763 = vadd.xlane.f32.xlu0 %v1762_v53  ;;  %v3241_v53 = vld [vmem:[%s4134_s7 + $0x10] sm:$0xff]  }
 0xe53   : > { %v1761_v54 = vmul.f32 %v1759_v35, %v1759_v35  ;;  %3061 = vmatpush3.bf16.msra.mxu0 %v3241_v53 }
 0xe54   : > { %3072 = vmatprep.subr.bf16.mxu0 %v3413_v57 }
 0xe55   : > { %v1765_v55 = vsel %vm1049_vm3, %v1761_v54, 0.0 }
 0xe56   : > { %1766 = vadd.xlane.f32.xlu1 %v1765_v55 }
 0xedf   : > { %v1764_v59 = vpop.xlane.xlu0 %1763 }
 0xee0   : > { %v1768_v60 = vmul.f32 0.03125, %v1764_v59 }
 0xee2   : > { %v1770_v61 = vadd.f32 1e-05, %v1768_v60 }
 0xee3   : > { %v1767_v62 = vpop.xlane.xlu1 %1766 }
 0xee4   : > { %3279 = vrsqrt.f32 %v1770_v61  ;;  %v1769_v63 = vmul.f32 0.03125, %v1767_v62 }
 0xee6   : > { %v1771_v0 = vadd.f32 1e-05, %v1769_v63 }
 0xee8   : > { %3281 = vrsqrt.f32 %v1771_v0 }
 0xeee   : > { %v3280_v1 = vpop.eup %3279 }
 0xeef   : > { %v1774_v2 = vmul.f32 %v3280_v1, %v1758_v31 }
 0xef1   : > { %v1782_v5 = vmul.f32 %v2859_v3, %v1774_v2 }
 0xef2   : > { %v3282_v4 = vpop.eup %3281 }
 0xef3   : > { %v1775_v6 = vmul.f32 %v3282_v4, %v1759_v35  ;;  %v1790_v9 = vadd.f32 %v2860_v7, %v1782_v5 }
 0xef5   : > { %v1783_v8 = vmul.f32 %v2859_v3, %v1775_v6 }
 0xef7   : > { %v1791_v10 = vadd.f32 %v2860_v7, %v1783_v8 }
 0xef9   : > { %v1792_v11 = vpack.c.bf16 %v1791_v10, %v1790_v9 }
 0xefb   : > { %3045 = vmatmul.mubr.msk.bf16.vlgmr.msra.gmra.mrb[32].mxu1 %vm1049_vm3, %v1792_v11 }
 0xefc   : > { %3050 = vmatprep.mubr.msk.bf16.mxu1 %vm3414_vm4, %v3413_v57 }
 0xfce   : > { %v1855_v13 = vpop.f32.mrb[32].mxu1 }
 0xfcf   : > { %v3046_v14 = vpop.f32.mrb[33].mxu1  ;;  %v1856_v16 = vadd.f32 %v2866_v12, %v1855_v13 }
 0xfd0   : > { %v1858_v15 = vpop.f32.mrb[34].mxu1 }
 0xfd1   : > { %v1859_v17 = vadd.f32 %v2866_v12, %v1858_v15  ;;  %v3047_v18 = vpop.f32.mrb[35].mxu1 }
 0xfd3   : > { %v3842_v20 = vpack.c.bf16 %v1859_v17, %v1856_v16 }
 0xfd5   : > { %1879 = vrot.lane.b32.xlu1 %v3842_v20, %s4135_s23 }
0x1047   : > { %v1880_v21 = vpop.permute.xlu1 %1879 }
0x1048   : > { %v1885_v22 = vsel %vm1178_vm5, %v1880_v21, 0 }
0x1049   : > { %3049 = vmatpush3.bf16.xpose.msra.mxu1 %v1885_v22 }
0x104a   : > { %3054 = vmatprep.subr.bf16.mxu1 %v3413_v57 }
0x1050   : > { %3051 = vmatmul.mubr.msk.bf16.vlgmr.msra.gmra.mrb[36].mxu1 %vm1178_vm5, %v3842_v20 }
0x1051   : > { %3056 = vmatprep.mubr.msk.bf16.mxu1 %vm3414_vm4, %v3413_v57 }
0x1123   : > { %v1921_v23 = vpop.f32.mrb[36].mxu1 }
0x1124   : > { %v1928_v19 = vmul.f32 0.25, %v1921_v23  ;;  %v3052_v24 = vpop.f32.mrb[37].mxu1  ;;  %v3242_v23 = vld [vmem:[%s4134_s7 + $0x18] sm:$0xff]   ;;  %s3321_s7 = scalar_lea.vmem %s3320_s6, 32 }
0x1125   : > { %v1924_v25 = vpop.f32.mrb[38].mxu1 }
0x1126   : > { %v1929_v26 = vmul.f32 0.25, %v1924_v25  ;;  %v3053_v27 = vpop.f32.mrb[39].mxu1  ;;  %v1930_v28 = vsel %vm1178_vm5, %v1928_v19, -inf }
0x1127   : > { %1931 = vmax.xlane.f32.xlu1 %v1930_v28  ;;  %v2875_v28 = vld [vmem:[%s4073_s8 + $0x1] ss:$0 sm:$0xff] }
0x1128   : > { %v1933_v29 = vsel %vm1178_vm5, %v1929_v26, -inf }
0x1129   : > { %1934 = vmax.xlane.f32.xlu0 %v1933_v29  ;;  %v1876_v29 = vadd.f32 %v2875_v28, %v3809_v41 }
0x1138   : > { %2055 = vrot.lane.b32.xlu1 %v3842_v20, %s4136_s0  ;;  %s3983_s0 = sand.u32 1, %s3401_s30  }
0x1139   : > { %s2680_s23 = scalar_lea.sflag [#allocation6], %s3983_s0 }
0x11b4   : > { %v1932_v30 = vpop.xlane.xlu1 %1931 }
0x11b5   : > { %v1936_v32 = vsub.f32 %v1928_v19, %v1932_v30 }
0x11b6   : > { %v1935_v33 = vpop.xlane.xlu0 %1934 }
0x11b7   : > { %v1938_v34 = vmul.f32 1.442695, %v1936_v32  ;;  %v1937_v36 = vsub.f32 %v1929_v26, %v1935_v33 }
0x11b8   : > { %v2056_v50 = vpop.permute.xlu1 %2055 }
0x11b9   : > { %3283 = vpow2.f32 %v1938_v34  ;;  %v1940_v37 = vmul.f32 1.442695, %v1937_v36  ;;  %v2061_v52 = vsel %vm1178_vm5, %v2056_v50, 0  ;;  %v1877_v34 = vadd.f32 %v2875_v28, %v3812_v43  ;;  %v3243_v50 = vld [vmem:[%s4076_s11 + $0x10] sm:$0xff]  }
0x11bb   : > { %3285 = vpow2.f32 %v1940_v37 }
0x11c3   : > { %v3284_v38 = vpop.eup %3283 }
0x11c4   : > { %v1942_v39 = vsel %vm1178_vm5, %v3284_v38, 0.0 }
0x11c5   : > { %v3286_v42 = vpop.eup %3285  ;;  %1943 = vadd.xlane.f32.xlu0 %v1942_v39 }
0x11c6   : > { %v1945_v40 = vsel %vm1178_vm5, %v3286_v42, 0.0 }
0x11c9   : > { %1946 = vadd.xlane.f32.xlu0 %v1945_v40 }
0x11df   : > { %1953 = vrot.lane.b32.xlu0 %v3842_v20, %s4137_s28  ;;  %s687_s28 = scalar_lea.vmem [#allocation5], %s3983_s0 }
0x11e0   : > { %s2705_s4 = sshll.u32 %s687_s28, 4  ;;  %s2706_s4 = int_to_ptr.vmem [resolvable:$true] %s2705_s4 }
0x11e1   : > { %s3315_s1 = scalar_lea.vmem %s2706_s4, 16  ;;  %p3322_p0 = scmp.lt.s32.totalorder %s2706_s4, %s3320_s6 }
0x11e2   : > { %p3316_p11 = scmp.ne.s32.totalorder %s2706_s4, %s3315_s1  ;;  %p3323_p1 = scmp.lt.s32.totalorder %s3321_s7, %s3315_s1 }
0x11e3   : > { %2053 = vrot.lane.b32.xlu0 %v3842_v20, %s4138_s5  ;;  %s4109_s5 = sshll.u32 %s3561_s18, 4 }
0x11e4   : > { %p3317_p12 = pnand %p3316_p11, %p3578_p5  ;;  %p3324_p2 = por %p3323_p1, %p3322_p0 }
0x11e6   : > { %p3318_p13 = pneg %p3317_p12 }
0x11e8   : > { %p3325_p3 = pnand %p3324_p2, %p3318_p13 }
0x1252   : > { %v1944_v44 = vpop.xlane.xlu0 %1943 }
0x1253   : > { %3287 = vrcp.f32 %v1944_v44 }
0x1256   : > { %v1947_v45 = vpop.xlane.xlu0 %1946 }
0x1257   : > { %3289 = vrcp.f32 %v1947_v45 }
0x125a   : > { %v1954_v46 = vpop.permute.xlu0 %1953 }
0x125b   : > { %3055 = vmatpush3.bf16.msra.mxu1 %v1954_v46 }
0x125c   : > { %3066 = vmatprep.subr.bf16.mxu1 %v3413_v57 }
0x125d   : > { %v3288_v47 = vpop.eup %3287 }
0x125e   : > { %v1950_v49 = vmul.f32 %v3288_v47, %v3284_v38  ;;  %v2054_v35 = vpop.permute.xlu0 %2053 }
0x1261   : > { %v3290_v48 = vpop.eup %3289 }
0x1262   : > { %v1951_v31 = vmul.f32 %v3290_v48, %v3286_v42 }
0x1264   : > { %v1952_v51 = vpack.c.bf16 %v1951_v31, %v1950_v49 }
0x1266   : > { %3057 = vmatmul.mubr.msk.bf16.vlgmr.msra.gmra.mrb[40].mxu1 %vm1178_vm5, %v1952_v51  ;;  %v3244_v51 = vld [vmem:[%s4076_s11 + $0x18] sm:$0xff]  }
0x1267   : > { %3067 = vmatpush3.bf16.xpose.msra.mxu1 %v2061_v52  ;;  %3068 = vmatprep.mubr.msk.bf16.mxu1 %vm3414_vm4, %v3413_v57 }
0x1268   : > { %3084 = vmatprep.subr.bf16.mxu1 %v3413_v57 }
0x126e   : > { %3069 = vmatmul.mubr.msk.bf16.vlgmr.msra.gmra.mrb[44].mxu1 %vm1178_vm5, %v2054_v35 }
0x126f   : > { %3088 = vmatprep.mubr.msk.bf16.mxu1 %vm3414_vm4, %v3413_v57  ;;  %3085 = vmatpush3.bf16.msra.mxu1 %v3243_v50 }
0x1270   : > { %3086 = vmatprep.subr.bf16.mxu1 %v3413_v57 }
0x1273   : > { %3087 = vmatpush3.bf16.msra.mxu1 %v3244_v51 }
0x1274   : > { %3092 = vmatprep.subr.bf16.mxu1 %v3413_v57 }
0x1339   : > { %v1993_v54 = vpop.f32.mrb[40].mxu1 }
0x133a   : > { %v3058_v55 = vpop.f32.mrb[41].mxu1 }
0x133b   : > { %v1996_v56 = vpop.f32.mrb[42].mxu1 }
0x133c   : > { %v2000_v58 = vpack.c.bf16 %v1996_v56, %v1993_v54  ;;  %v3059_v59 = vpop.f32.mrb[43].mxu1 }
0x133e   : > { %3063 = vmatmul.mubr.msk.bf16.vlgmr.msra.gmra.mrb[36].mxu0 %vm1178_vm5, %v2000_v58 }
0x133f   : > { %3074 = vmatprep.mubr.msk.bf16.mxu0 %vm3414_vm4, %v3413_v57 }
0x1341   : > { %v2097_v60 = vpop.f32.mrb[44].mxu1 }
0x1342   : > { %v2104_v61 = vmul.f32 0.25, %v2097_v60  ;;  %v3070_v62 = vpop.f32.mrb[45].mxu1  ;;  %v2886_v60 = vld [vmem:[%s4074_s9 + $0x1] ss:$0 sm:$0xff] }
0x1343   : > { %v2100_v63 = vpop.f32.mrb[46].mxu1 }
0x1344   : > { %v2105_v0 = vmul.f32 0.25, %v2100_v63  ;;  %v3071_v1 = vpop.f32.mrb[47].mxu1  ;;  %v2106_v2 = vsel %vm1178_vm5, %v2104_v61, -inf }
0x1345   : > { %2107 = vmax.xlane.f32.xlu0 %v2106_v2 }
0x1346   : > { %v2109_v3 = vsel %vm1178_vm5, %v2105_v0, -inf }
0x1347   : > { %2110 = vmax.xlane.f32.xlu1 %v2109_v3 }
0x13d2   : > { %v2108_v4 = vpop.xlane.xlu0 %2107 }
0x13d3   : > { %v2112_v5 = vsub.f32 %v2104_v61, %v2108_v4 }
0x13d4   : > { %v2111_v6 = vpop.xlane.xlu1 %2110 }
0x13d5   : > { %v2114_v7 = vmul.f32 1.442695, %v2112_v5  ;;  %v2113_v8 = vsub.f32 %v2105_v0, %v2111_v6  ;;  %v2887_v0 = vld [vmem:[%s4075_s10 + $0x1] ss:$0 sm:$0xff]  ;;  %v3246_v6 = vld [vmem:[%s4078_s13 + $0x28] sm:$0xff]  }
0x13d6   : > { %v3245_v5 = vld [vmem:[%s4078_s13 + $0x20] sm:$0xff]  }
0x13d7   : > { %3291 = vpow2.f32 %v2114_v7  ;;  %v2116_v9 = vmul.f32 1.442695, %v2113_v8  ;;  %v3247_v7 = vld [vmem:[%s4078_s13 + $0x30] sm:$0xff]   ;;  %v3248_v8 = vld [vmem:[%s4078_s13 + $0x38] sm:$0xff]  }
0x13d9   : > { %3293 = vpow2.f32 %v2116_v9  ;;  %v2893_v9 = vld [vmem:[%s4077_s12 + $0x1] ss:$0 sm:$0xff] }
0x13e1   : > { %v3292_v10 = vpop.eup %3291 }
0x13e2   : > { %v2118_v11 = vsel %vm1178_vm5, %v3292_v10, 0.0 }
0x13e3   : > { %v3294_v12 = vpop.eup %3293  ;;  %2119 = vadd.xlane.f32.xlu0 %v2118_v11 }
0x13e4   : > { %v2121_v13 = vsel %vm1178_vm5, %v3294_v12, 0.0 }
0x13e7   : > { %2122 = vadd.xlane.f32.xlu0 %v2121_v13 }
0x13fd   : > { %2129 = vrot.lane.b32.xlu0 %v3842_v20, %s4139_s29  ;;  %s3993_s29 = scalar_lea.hbm %s4087_s22, %s4109_s5 }
0x1470   : > { %v2120_v14 = vpop.xlane.xlu0 %2119 }
0x1471   : > { %3295 = vrcp.f32 %v2120_v14 }
0x1474   : > { %v2123_v15 = vpop.xlane.xlu0 %2122 }
0x1475   : > { %3297 = vrcp.f32 %v2123_v15 }
0x1478   : > { %v2130_v16 = vpop.permute.xlu0 %2129 }
0x1479   : > { %3073 = vmatpush3.bf16.msra.mxu0 %v2130_v16 }
0x147a   : > { %3078 = vmatprep.subr.bf16.mxu0 %v3413_v57 }
0x147b   : > { %v3296_v17 = vpop.eup %3295 }
0x147c   : > { %v2126_v21 = vmul.f32 %v3296_v17, %v3292_v10 }
0x147f   : > { %v3298_v18 = vpop.eup %3297 }
0x1480   : > { %v2127_v22 = vmul.f32 %v3298_v18, %v3294_v12 }
0x1482   : > { %v2128_v19 = vpack.c.bf16 %v2127_v22, %v2126_v21 }
0x1484   : > { %3075 = vmatmul.mubr.msk.bf16.vlgmr.msra.gmra.mrb[40].mxu0 %vm1178_vm5, %v2128_v19 }
0x1485   : > { %3079 = vmatpush3.bf16.msra.mxu0 %v3242_v23  ;;  %3080 = vmatprep.mubr.msk.bf16.mxu0 %vm3414_vm4, %v3413_v57 }
0x1486   : > { %3104 = vmatprep.subr.bf16.mxu0 %v3413_v57 }
0x1557   : > { %v2169_v20 = vpop.f32.mrb[40].mxu0 }
0x1558   : > { %v3076_v24 = vpop.f32.mrb[41].mxu0 }
0x1559   : > { %v2172_v25 = vpop.f32.mrb[42].mxu0 }
0x155a   : > { %v2176_v26 = vpack.c.bf16 %v2172_v25, %v2169_v20  ;;  %v3077_v27 = vpop.f32.mrb[43].mxu0 }
0x155c   : > { %3081 = vmatmul.mubr.msk.bf16.vlgmr.msra.gmra.mrb[36].mxu0 %vm1178_vm5, %v2176_v26 }
0x155d   : > { %3106 = vmatprep.mubr.msk.bf16.mxu0 %vm3414_vm4, %v3413_v57 }
0x162f   : > { %v2220_v30 = vpop.f32.mrb[36].mxu0 }
0x1630   : > { %v3899_v32 = vadd.f32 %v2220_v30, %v1876_v29  ;;  %v3082_v33 = vpop.f32.mrb[37].mxu0 }
0x1631   : > { %v2223_v36 = vpop.f32.mrb[38].mxu0 }
0x1632   : > { %v3902_v37 = vadd.f32 %v2223_v36, %v1877_v34  ;;  %v3083_v38 = vpop.f32.mrb[39].mxu0  ;;  %v2233_v39 = vsel %vm1049_vm3, %v3899_v32, 0.0 }
0x1633   : > { %2234 = vadd.xlane.f32.xlu1 %v2233_v39 }
0x1634   : > { %v2236_v42 = vsel %vm1049_vm3, %v3902_v37, 0.0 }
0x1637   : > { %2237 = vadd.xlane.f32.xlu1 %v2236_v42  ;;  %v2911_v42 = vld [vmem:[%s4079_s14 + $0x1] ss:$0 sm:$0xff] }
0x16c0   : > { %v2235_v40 = vpop.xlane.xlu1 %2234 }
0x16c1   : > { %v2239_v41 = vmul.f32 0.03125, %v2235_v40 }
0x16c3   : > { %v2241_v44 = vsub.f32 %v3899_v32, %v2239_v41 }
0x16c4   : > { %v2238_v45 = vpop.xlane.xlu1 %2237 }
0x16c5   : > { %v2240_v46 = vmul.f32 0.03125, %v2238_v45  ;;  %v2243_v47 = vmul.f32 %v2241_v44, %v2241_v44 }
0x16c7   : > { %v2242_v43 = vsub.f32 %v3902_v37, %v2240_v46  ;;  %v2245_v48 = vsel %vm1049_vm3, %v2243_v47, 0.0 }
0x16c8   : > { %2246 = vadd.xlane.f32.xlu1 %v2245_v48 }
0x16c9   : > { %v2244_v49 = vmul.f32 %v2242_v43, %v2242_v43 }
0x16cb   : > { %v2248_v31 = vsel %vm1049_vm3, %v2244_v49, 0.0 }
0x16cc   : > { %2249 = vadd.xlane.f32.xlu1 %v2248_v31 }
0x1755   : > { %v2247_v52 = vpop.xlane.xlu1 %2246 }
0x1756   : > { %v2251_v35 = vmul.f32 0.03125, %v2247_v52 }
0x1758   : > { %v2253_v53 = vadd.f32 1e-05, %v2251_v35 }
0x1759   : > { %v2250_v54 = vpop.xlane.xlu1 %2249 }
0x175a   : > { %3299 = vrsqrt.f32 %v2253_v53  ;;  %v2252_v55 = vmul.f32 0.03125, %v2250_v54 }
0x175c   : > { %v2254_v56 = vadd.f32 1e-05, %v2252_v55 }
0x175e   : > { %3301 = vrsqrt.f32 %v2254_v56  ;;  %v2499_v56 = vld [vmem:[#allocation2] sm:$0x1] }
0x1764   : > { %v3300_v58 = vpop.eup %3299 }
0x1765   : > { %v2257_v59 = vmul.f32 %v3300_v58, %v2241_v44 }
0x1767   : > { %v2265_v62 = vmul.f32 %v2886_v60, %v2257_v59 }
0x1768   : > { %v3302_v61 = vpop.eup %3301 }
0x1769   : > { %v2258_v63 = vmul.f32 %v3302_v61, %v2242_v43  ;;  %v2273_v2 = vadd.f32 %v2887_v0, %v2265_v62 }
0x176b   : > { %v2266_v1 = vmul.f32 %v2886_v60, %v2258_v63 }
0x176d   : > { %v2274_v3 = vadd.f32 %v2887_v0, %v2266_v1 }
0x176f   : > { %v2275_v4 = vpack.c.bf16 %v2274_v3, %v2273_v2  ;;  %v2912_v2 = vld [vmem:[%s4080_s15] ss:$0 sm:$0xff] }
0x1771   : > { %3089 = vmatmul.mubr.msk.bf16.vlgmr.msra.gmra.mrb[48].mxu1 %vm1049_vm3, %v2275_v4 }
0x1772   : > { %3100 = vmatprep.mubr.msk.bf16.mxu1 %vm3414_vm4, %v3413_v57  ;;  %3093 = vmatpush3.bf16.msra.mxu1 %v3245_v5 }
0x1773   : > { %3094 = vmatprep.subr.bf16.mxu1 %v3413_v57 }
0x1776   : > { %3095 = vmatpush3.bf16.msra.mxu1 %v3246_v6  ;;  %v2913_v6 = vld [vmem:[%s4081_s16] ss:$0 sm:$0xff] }
0x1777   : > { %3096 = vmatprep.subr.bf16.mxu1 %v3413_v57 }
0x177a   : > { %3097 = vmatpush3.bf16.msra.mxu1 %v3247_v7 }
0x177b   : > { %3098 = vmatprep.subr.bf16.mxu1 %v3413_v57 }
0x177e   : > { %3099 = vmatpush3.bf16.msra.mxu1 %v3248_v8 }
0x177f   : > { %3116 = vmatprep.subr.bf16.mxu1 %v3413_v57 }
0x1844   : > { %v2338_v10 = vpop.f32.mrb[48].mxu1 }
0x1845   : > { %v2339_v11 = vadd.f32 %v2893_v9, %v2338_v10  ;;  %v3090_v12 = vpop.f32.mrb[49].mxu1 }
0x1846   : > { %v2341_v13 = vpop.f32.mrb[50].mxu1  ;;  %v2498_v12 = vld [vmem:[%s4082_s17] sm:$0x1] }
0x1847   : > { %v2347_v14 = vmul.f32 0.044715, %v2339_v11  ;;  %v2342_v15 = vadd.f32 %v2893_v9, %v2341_v13  ;;  %v3091_v16 = vpop.f32.mrb[51].mxu1  ;;  %v2345_v29 = vmul.f32 0.5, %v2339_v11  ;;  %v2505_v13 = vlaneseq }
0x1849   : > { %v2349_v17 = vmul.f32 %v2347_v14, %v2339_v11  ;;  %v2348_v18 = vmul.f32 0.044715, %v2342_v15  ;;  %v2346_v30 = vmul.f32 0.5, %v2342_v15  ;;  %v2506_v14 = vshrl.u32 %v2505_v13, 7 }
0x184b   : > { %v2351_v21 = vmul.f32 %v2349_v17, %v2339_v11  ;;  %v2350_v22 = vmul.f32 %v2348_v18, %v2342_v15 }
0x184d   : > { %v2353_v23 = vadd.f32 %v2351_v21, %v2339_v11  ;;  %v2352_v19 = vmul.f32 %v2350_v22, %v2342_v15 }
0x184f   : > { %v2355_v20 = vmul.f32 0.7978846, %v2353_v23  ;;  %v2354_v24 = vadd.f32 %v2352_v19, %v2342_v15  ;;  %v2507_v15 = vsub.s32 0, %v2506_v14 }
0x1851   : > { %3303 = vtanh.f32 %v2355_v20  ;;  %v2356_v25 = vmul.f32 0.7978846, %v2354_v24 }
0x1853   : > { %3305 = vtanh.f32 %v2356_v25 }
0x185b   : > { %v3304_v26 = vpop.eup %3303 }
0x185c   : > { %v2359_v27 = vadd.f32 1.0, %v3304_v26 }
0x185d   : > { %v3306_v28 = vpop.eup %3305 }
0x185e   : > { %v2360_v33 = vadd.f32 1.0, %v3306_v28  ;;  %v2361_v34 = vmul.f32 %v2359_v27, %v2345_v29  ;;  %v3249_v29 = vld [vmem:[%s4084_s19] sm:$0xff]  }
0x1860   : > { %v2362_v36 = vmul.f32 %v2360_v33, %v2346_v30 }
0x1862   : > { %v2363_v38 = vpack.c.bf16 %v2362_v36, %v2361_v34 }
0x1864   : > { %3101 = vmatmul.mubr.msk.bf16.vlgmr.msra.gmra.mrb[52].mxu1 %vm1690_vm6, %v2363_v38  ;;  %v3250_v38 = vld [vmem:[%s4084_s19 + $0x8] sm:$0xff]  }
0x1865   : > { %3120 = vmatprep.mubr.msk.bf16.mxu1 %vm3414_vm4, %v3413_v57  ;;  %3117 = vmatpush3.bf16.msra.mxu1 %v3249_v29 }
0x1866   : > { %3118 = vmatprep.subr.bf16.mxu1 %v3413_v57 }
0x1869   : > { %3119 = vmatpush3.bf16.msra.mxu1 %v3250_v38 }
0x1937   : > { %v2434_v39 = vpop.f32.mrb[52].mxu1 }
0x1938   : > { %v2441_v40 = vadd.f32 %v3899_v32, %v2434_v39  ;;  %v3102_v41 = vpop.f32.mrb[53].mxu1 }
0x1939   : > { %v2437_v44 = vpop.f32.mrb[54].mxu1 }
0x193a   : > { %v2442_v45 = vadd.f32 %v3902_v37, %v2437_v44  ;;  %v3103_v46 = vpop.f32.mrb[55].mxu1  ;;  %v2451_v47 = vadd.f32 %v2911_v42, %v2441_v40 }
0x193c   : > { %v2455_v43 = vsel %vm1049_vm3, %v2451_v47, 0.0  ;;  %v2452_v48 = vadd.f32 %v2911_v42, %v2442_v45 }
0x193d   : > { %2456 = vadd.xlane.f32.xlu1 %v2455_v43 }
0x193e   : > { %v2458_v49 = vsel %vm1049_vm3, %v2452_v48, 0.0 }
0x193f   : > { %2459 = vadd.xlane.f32.xlu0 %v2458_v49 }
0x19ca   : > { %v2457_v31 = vpop.xlane.xlu1 %2456 }
0x19cb   : > { %v2461_v50 = vmul.f32 0.03125, %v2457_v31 }
0x19cc   : > { %v2460_v51 = vpop.xlane.xlu0 %2459 }
0x19cd   : > { %v2463_v52 = vsub.f32 %v2451_v47, %v2461_v50  ;;  %v2462_v35 = vmul.f32 0.03125, %v2460_v51 }
0x19cf   : > { %v2464_v53 = vsub.f32 %v2452_v48, %v2462_v35  ;;  %v2465_v32 = vmul.f32 %v2463_v52, %v2463_v52 }
0x19d1   : > { %v2467_v54 = vsel %vm1049_vm3, %v2465_v32, 0.0  ;;  %v2466_v55 = vmul.f32 %v2464_v53, %v2464_v53 }
0x19d2   : > { %2468 = vadd.xlane.f32.xlu1 %v2467_v54 }
0x19d3   : > { %v2470_v37 = vsel %vm1049_vm3, %v2466_v55, 0.0 }
0x19d6   : > { %2471 = vadd.xlane.f32.xlu1 %v2470_v37 }
0x19e7   : > { %2502 = vperm.xlu1 %3190, %v2499_v56  }
0x1a5f   : > { %v2469_v58 = vpop.xlane.xlu1 %2468 }
0x1a60   : > { %v2473_v59 = vmul.f32 0.03125, %v2469_v58 }
0x1a62   : > { %v2475_v60 = vadd.f32 1e-05, %v2473_v59 }
0x1a63   : > { %v2472_v61 = vpop.xlane.xlu1 %2471 }
0x1a64   : > { %3307 = vrsqrt.f32 %v2475_v60  ;;  %v2474_v62 = vmul.f32 0.03125, %v2472_v61 }
0x1a66   : > { %v2476_v63 = vadd.f32 1e-05, %v2474_v62 }
0x1a67   : > { %v2503_v16 = vpop.permute.xlu1 %2502 }
0x1a68   : > { %3309 = vrsqrt.f32 %v2476_v63  ;;  %v2508_v17 = vrot.slane %v2503_v16, %v2507_v15 }
0x1a6e   : > { %v3308_v0 = vpop.eup %3307 }
0x1a6f   : > { %v2479_v1 = vmul.f32 %v3308_v0, %v2463_v52 }
0x1a71   : > { %v2487_v5 = vmul.f32 %v2912_v2, %v2479_v1 }
0x1a72   : > { %v3310_v3 = vpop.eup %3309 }
0x1a73   : > { %v2480_v4 = vmul.f32 %v3310_v3, %v2464_v53  ;;  %v2495_v8 = vadd.f32 %v2913_v6, %v2487_v5 }
0x1a75   : > { %v2488_v7 = vmul.f32 %v2912_v2, %v2480_v4 }
0x1a77   : > { %v2496_v9 = vadd.f32 %v2913_v6, %v2488_v7 }
0x1a79   : > { %v2497_v10 = vpack.c.bf16 %v2496_v9, %v2495_v8 }
0x1a7b   : > { %v2513_v11 = vsel %vm1049_vm3, %v2497_v10, 0 }
0x1a7c   : > { %3105 = vmatpush3.bf16.xpose.msra.mxu0 %v2513_v11 }
0x1a7d   : > { %3110 = vmatprep.subr.bf16.mxu0 %v3413_v57 }
0x1a83   : > { %3107 = vmatmul.mubr.msk.bf16.vlgmr.msra.gmra.mrb[44].mxu0 %vm1049_vm3, %v2498_v12 }
0x1a84   : > { %3111 = vmatpush3.bf16.msra.mxu0 %v2497_v10  ;;  %3112 = vmatprep.mubr.msk.bf16.mxu0 %vm3414_vm4, %v3413_v57 }
0x1b56   : > { %v2549_v18 = vpop.f32.mrb[44].mxu0 }
0x1b57   : > { %v2550_v21 = vadd.f32 %v2549_v18, %v2508_v17  ;;  %v3108_v22 = vpop.f32.mrb[45].mxu0 }
0x1b58   : > { %v2552_v23 = vpop.f32.mrb[46].mxu0 }
0x1b59   : > { %v3109_v19 = vpop.f32.mrb[47].mxu0  ;;  %v2556_v20 = vsel %vm2555_vm7, %v2550_v21, -inf }
0x1b5a   : > { %2557 = vmax.xlane.f32.xlu1 %v2556_v20 }
0x1be7   : > { %v2558_v24 = vpop.xlane.xlu1 %2557 }
0x1be8   : > { %v2559_v25 = vsub.f32 %v2550_v21, %v2558_v24 }
0x1bea   : > { %v2560_v26 = vmul.f32 1.442695, %v2559_v25 }
0x1bec   : > { %3311 = vpow2.f32 %v2560_v26 }
0x1bf6   : > { %v3312_v27 = vpop.eup %3311 }
0x1bf7   : > { %v2562_v28 = vsel %vm2555_vm7, %v3312_v27, 0.0 }
0x1bf8   : > { %2563 = vadd.xlane.f32.xlu0 %v2562_v28 }
0x1c85   : > { %v2564_v30 = vpop.xlane.xlu0 %2563 }
0x1c86   : > { %3313 = vrcp.f32 %v2564_v30 }
0x1c90   : > { %v3314_v33 = vpop.eup %3313 }
0x1c91   : > { %v2566_v34 = vmul.f32 %v3314_v33, %v3312_v27 }
0x1c93   : > { %v2567_v36 = vpack.c.bf16 %v2566_v34, %v2566_v34 }
0x1c95   : > { %3113 = vmatmul.mubr.msk.bf16.vlgmr.msra.gmra.mrb[48].mxu0 %vm1178_vm5, %v2567_v36 }
0x1d68   : > { %v2605_v57 = vpop.f32.mrb[48].mxu0 }
0x1d69   : > { %v2611_v39 = vpack.c.bf16 %v2605_v57, %v2605_v57  ;;  %2674 = vst.msk [vmem:[%s687_s28] sm:$0x1] %vm2673_vm8, %v2605_v57  ;;  %v3114_v42 = vpop.f32.mrb[49].mxu0 }
0x1d6a   : > { %v2608_v40 = vpop.f32.mrb[50].mxu0 }
0x1d6b   : > { %v3115_v41 = vpop.f32.mrb[51].mxu0  ;;  %3121 = vmatmul.mubr.msk.bf16.vlgmr.msra.gmra.mrb[56].mxu1 %vm1049_vm3, %v2611_v39 }
0x1d6c   : > { %3328 = shalt.err (!%p3325_p3)
}
0x1d6d   : > { %s3329_s28 = scalar_lea.hbm %s3993_s29, 16  ;;  %s3333_s2 = scalar_lea.hbm %s4087_s22, 32 }
0x1d6e   : > { %p3330_p4 = scmp.ne.s32.totalorder %s3993_s29, %s3329_s28  ;;  %p3334_p9 = scmp.lt.u32.totalorder %s3993_s29, %s4087_s22 }
0x1d6f   : > { %p3335_p10 = scmp.lt.u32.totalorder %s3333_s2, %s3329_s28  ;;  %p3337_p12 = scmp.lt.u32.totalorder %s3329_s28, %s3993_s29 }
0x1d70   : > { %p3331_p7 = pnand %p3330_p4, %p3578_p5 }
0x1d71   : > { %p3336_p11 = por %p3335_p10, %p3334_p9 }
0x1d72   : > { %p3332_p8 = pneg %p3331_p7 }
0x1d73   : > { %p3338_p13 = por %p3337_p12, %p3336_p11 }
0x1d75   : > { %p3339_p0 = pnand %p3338_p13, %p3332_p8 }
0x1d77   : > { %3342 = shalt.err (!%p3339_p0)
}
0x1d78   : > { %3138 = dma.vmem_to_hbm [thread:$0]  (%p3578_p5), %s2706_s4, 16, %s3993_s29, %s2680_s23   ;;  %v2616_v44 = vld [vmem:[%s4085_s20] sm:$0x1] }
0x1d79   : > { %s681_s5 = scalar_lea.vmem [#allocation3], %s3983_s0  ;;  %s4140_s28 = sshll.u32 %s3561_s18, 4 }
0x1d7a   : > { %s2692_s3 = sshll.u32 %s681_s5, 4  ;;  %s4022_s6 = scalar_lea.hbm %s4086_s21, %s4140_s28  ;;  %s4024_s3 = int_to_ptr.vmem [resolvable:$true] %s2692_s3 }
0x1d7b   : > { %s2676_s29 = scalar_lea.sflag [#allocation4], %s3983_s0  ;;  %s3343_s4 = scalar_lea.vmem %s4024_s3, 16 }
0x1d7c   : > { %p3344_p1 = scmp.ne.s32.totalorder %s4024_s3, %s3343_s4  ;;  %s3421_s18 = smov [#allocation3]  }
0x1d7d   : > { %s3347_s23 = sshll.u32 %s3421_s18, 4  ;;  %s3348_s23 = int_to_ptr.vmem [resolvable:$false] %s3347_s23 }
0x1d7e   : > { %p3345_p2 = pnand %p3344_p1, %p3578_p5  ;;  %s3349_s7 = scalar_lea.vmem %s3348_s23, 32 }
0x1d7f   : > { %p3350_p4 = scmp.lt.s32.totalorder %s4024_s3, %s3348_s23  ;;  %p3351_p7 = scmp.lt.s32.totalorder %s3349_s7, %s3343_s4 }
0x1d80   : > { %p3346_p3 = pneg %p3345_p2 }
0x1d81   : > { %p3352_p8 = por %p3351_p7, %p3350_p4 }
0x1d83   : > { %p3353_p9 = pnand %p3352_p8, %p3346_p3 }
0x1e3e   : > { %v2666_v45 = vpop.f32.mrb[56].mxu1 }
0x1e3f   : > { %v2667_v46 = vadd.f32 %v2666_v45, %v2616_v44  ;;  %v3122_v47 = vpop.f32.mrb[57].mxu1 }
0x1e40   : > { %v2669_v43 = vpop.f32.mrb[58].mxu1 }
0x1e41   : > { %2672 = vst [vmem:[%s681_s5] sm:$0x1] %v2667_v46  ;;  %v3123_v48 = vpop.f32.mrb[59].mxu1 }
0x1e42   : > { %3356 = shalt.err (!%p3353_p9)
}
0x1e43   : > { %s3357_s0 = scalar_lea.hbm %s4022_s6, 16  ;;  %s3361_s28 = scalar_lea.hbm %s4086_s21, 32 }
0x1e44   : > { %p3358_p10 = scmp.ne.s32.totalorder %s4022_s6, %s3357_s0  ;;  %p3362_p13 = scmp.lt.u32.totalorder %s4022_s6, %s4086_s21 }
0x1e45   : > { %p3363_p0 = scmp.lt.u32.totalorder %s3361_s28, %s3357_s0  ;;  %p3365_p2 = scmp.lt.u32.totalorder %s3357_s0, %s4022_s6 }
0x1e46   : > { %p3359_p11 = pnand %p3358_p10, %p3578_p5 }
0x1e47   : > { %p3364_p1 = por %p3363_p0, %p3362_p13 }
0x1e48   : > { %p3360_p12 = pneg %p3359_p11 }
0x1e49   : > { %p3366_p3 = por %p3365_p2, %p3364_p1 }
0x1e4b   : > { %p3367_p4 = pnand %p3366_p3, %p3360_p12 }
0x1e4d   : > { %3370 = shalt.err (!%p3367_p4)
}
0x1e4e   : > { %3137 = dma.vmem_to_hbm [thread:$0]  (%p3578_p5), %s4024_s3, 16, %s4022_s6, %s2676_s29  }
0x1e4f PF: > { %s4141_s4 = sld [smem:[#allocation11_spill]]  ;;  %s4142_s18 = sld [smem:[#allocation9_spill]] }
0x1e55   : > { %p3148_p7 = scmp.ge.s32.totalorder %s4141_s4, 2  ;;  %s2717_s7 = sand.u32 1, %s4142_s18  }
0x1e56   : > { %s2718_s1 = scalar_lea.sflag [#allocation4], %s2717_s7 }
0x1e57   : > { %p3142_p8 = pnand %p3148_p7, %p3582_p6 }
0x1e59   : > { %3388 = dma.done.wait (!%p3142_p8), %s2718_s1, 16  }
0x1e5a   : > { %3390 = vsyncadd (!%p3142_p8), %s2718_s1, 4294967280  ;;  %s2726_s0 = scalar_lea.sflag [#allocation6], %s2717_s7 }
0x1e5b   : > { %3392 = dma.done.wait (!%p3142_p8), %s2726_s0, 16  }
0x1e5c   : > { %3394 = vsyncadd (!%p3142_p8), %s2726_s0, 4294967280  ;;  %s4144_s0 = sld [smem:[#allocation12_spill]]  ;;  %s4145_s25 = sld [smem:[#allocation10_spill]] }
0x1e5d   : > { %s4146_s4 = sld [smem:[#allocation13_spill]]  ;;  %s4147_s29 = smov %s3401_s30 }
0x1e62   : > { %p38_p5 = scmp.ge.s32.totalorder %s4144_s0, 4   ;;  %s4148_s30 = smov %s4145_s25 }
0x1e64   :  { %40 = sbr.rel (!%p38_p5) target bundleno = 14 (0xe), region = 168 }
0x1e6b   :  { %2730 = vsyncpa [#allocation4], 1 }
0x1e6c   :  { %2732 = vsyncpa [#allocation4 + $0x1], 1 }
0x1e6d   :  { %2733 = vsyncpa [#allocation6], 1 }
0x1e6e   :  { %2735 = vsyncpa [#allocation6 + $0x1], 1 }

</bundles_post_ra>
